<compile_context>
chip_gen: v7x
topology: tpu7x:2x2x1
jax: 0.10.0
libtpu: 0.0.40
codegen_flags: <defaults>
</compile_context>

<pallas_src>
import functools

import jax
import jax.numpy as jnp
import numpy as np
from jax.experimental import pallas as pl
from jax.experimental.pallas import tpu as pltpu

C_PAD = 128            # every internal channel dim padded to one lane-dense width
EXP_TAPS = 9           # 3x3 expand conv -> 9 taps; fused K = EXP_TAPS * C_PAD
STEM_K_PAD = 32        # stem im2col K: 3*3*3 = 27 -> 32
NUM_CLASSES = 2
NEG_BIAS = -1e30       # bias of padded classifier columns -> exp() underflows to 0
SUBLANE = 8            # f32 sublane tile width


# ----------------------------------------------------------------------------
# Single fused Pallas kernel: one grid step == one image, everything in VMEM
# ----------------------------------------------------------------------------
def _fused_kernel(xc_ref, ws_ref, bs_ref, we_ref, be_ref, wp_ref, bp_ref,
                  wh_ref, bh_ref, wc_ref, bc_ref, o_ref, pad_ref, cols_ref,
                  *, Ho, Wo):
    f32, bf16 = jnp.float32, jnp.bfloat16
    Hp, Wp, C = pad_ref.shape
    M = Ho * Wo

    # ---- stem: 3x3 s2 conv (im2col'd in wrapper, K padded to 32) + SiLU ------
    s = jnp.dot(xc_ref[...], ws_ref[...], preferred_element_type=f32) + bs_ref[...]
    s = s * jax.nn.sigmoid(s)                               # [M, C] f32, stays live

    # ---- stem activation -> spatially padded VMEM scratch --------------------
    # Border-only zeroing (O(perimeter)): just the halo ring the taps read.
    pad_ref[0:1, :, :] = jnp.zeros((1, Wp, C), f32)
    pad_ref[Ho + 1:Ho + 2, :, :] = jnp.zeros((1, Wp, C), f32)
    pad_ref[:, 0:1, :] = jnp.zeros((Hp, 1, C), f32)
    pad_ref[:, Wo + 1:Wo + 2, :] = jnp.zeros((Hp, 1, C), f32)
    pad_ref[1:1 + Ho, 1:1 + Wo, :] = s.reshape(Ho, Wo, C)

    # ---- build bf16 im2col scratch [M, 9C]: one lane-aligned store per tap ---
    for ki in range(3):
        for kj in range(3):
            t = ki * 3 + kj
            tap = pad_ref[ki:ki + Ho, kj:kj + Wo, :].reshape(M, C)
            cols_ref[:, t * C:(t + 1) * C] = tap.astype(bf16)

    # ---- fused-MBConv expand: ONE K = 9*C contraction on the MXU + SiLU ------
    e = (jnp.dot(cols_ref[...], we_ref[...], preferred_element_type=f32)
         + be_ref[...])
    e = e * jax.nn.sigmoid(e)

    # ---- fused-MBConv project 1x1 (no act) + residual (stem act, f32) --------
    p = (jnp.dot(e.astype(bf16), wp_ref[...], preferred_element_type=f32)
         + bp_ref[...] + s)

    # ---- conv_head 1x1 + SiLU, global-average-pool ----------------------------
    h = (jnp.dot(p.astype(bf16), wh_ref[...], preferred_element_type=f32)
         + bh_ref[...])
    h = h * jax.nn.sigmoid(h)
    pooled = jnp.mean(h, axis=0, keepdims=True)             # [1, C]

    # ---- classifier + softmax (padded classes carry -1e30 bias -> prob 0) ----
    logits = (jnp.dot(pooled.astype(bf16), wc_ref[...], preferred_element_type=f32)
              + bc_ref[...])
    m = jnp.max(logits, axis=-1, keepdims=True)
    ex = jnp.exp(logits - m)
    probs = ex / jnp.sum(ex, axis=-1, keepdims=True)
    o_ref[...] = probs.astype(o_ref.dtype)                  # lane-dense (1, 128)


def _wspec(shape):
    # full-array block, constant index_map -> weight stays resident across steps
    if len(shape) == 2:
        return pl.BlockSpec(shape, lambda b: (0, 0))
    return pl.BlockSpec(shape, lambda b: (0, 0, 0))


def fused_forward(x_cols, pk, *, B, Ho, Wo):
    _, M, K0 = x_cols.shape
    C = C_PAD
    Hp = Ho + 2
    Wp = ((Wo + 2 + SUBLANE - 1) // SUBLANE) * SUBLANE

    args = (x_cols, pk["w_stem"], pk["b_stem"], pk["w_exp"], pk["b_exp"],
            pk["w_prj"], pk["b_prj"], pk["w_head"], pk["b_head"],
            pk["w_cls"], pk["b_cls"])

    in_specs = [pl.BlockSpec((None, M, K0), lambda b: (b, 0, 0))]
    in_specs += [_wspec(a.shape) for a in args[1:]]

    Mtot = B * M
    flops = (2 * Mtot * K0 * C                 # stem
             + 2 * Mtot * (EXP_TAPS * C) * C   # expand (single K=1152 contraction)
             + 2 * Mtot * C * C                # project
             + 2 * Mtot * C * C                # conv_head
             + 2 * B * C * C)                  # classifier
    transcendentals = 3 * Mtot * C + B * C
    bytes_accessed = (sum(int(np.prod(a.shape)) * a.dtype.itemsize for a in args)
                      + B * C * 4)

    kernel = functools.partial(_fused_kernel, Ho=Ho, Wo=Wo)

    out = pl.pallas_call(
        kernel,
        out_shape=jax.ShapeDtypeStruct((B, 1, C), jnp.float32),
        grid=(B,),
        in_specs=in_specs,
        out_specs=pl.BlockSpec((None, 1, C), lambda b: (b, 0, 0)),
        scratch_shapes=[pltpu.VMEM((Hp, Wp, C), jnp.float32),
                        pltpu.VMEM((M, EXP_TAPS * C), jnp.bfloat16)],
        compiler_params=pltpu.CompilerParams(
            dimension_semantics=("parallel",),
            vmem_limit_bytes=32 * 1024 * 1024),
        cost_estimate=pl.CostEstimate(flops=flops,
                                      transcendentals=transcendentals,
                                      bytes_accessed=bytes_accessed),
    )(*args)
    # lane-dense kernel output; slice the 2 real classes in the wrapper
    return out.reshape(B, C)[:, :NUM_CLASSES]


# ----------------------------------------------------------------------------
# Wrapper-side glue: stem im2col (3-channel input -> negligible) — bf16, K padded
# ----------------------------------------------------------------------------
def stem_im2col(x_nhwc, kh=3, kw=3, stride=2, pad=1):
    x = jnp.pad(x_nhwc, ((0, 0), (pad, pad), (pad, pad), (0, 0)))
    B, H, W, Cin = x.shape
    Ho = (H - kh) // stride + 1
    Wo = (W - kw) // stride + 1
    patches = []
    for i in range(kh):
        for j in range(kw):
            patches.append(x[:, i:i + Ho * stride:stride, j:j + Wo * stride:stride, :])
    cols = jnp.concatenate(patches, axis=-1).reshape(B, Ho * Wo, kh * kw * Cin)
    cols = jnp.pad(cols, ((0, 0), (0, 0), (0, STEM_K_PAD - kh * kw * Cin)))
    return cols.astype(jnp.bfloat16), B, Ho, Wo


# ----------------------------------------------------------------------------
# Deterministic parameter init (+ BatchNorm folding) and 128-padded packing
# ----------------------------------------------------------------------------
def fold_bn(w, gamma, beta, mean, var, eps=1e-3):
    scale = gamma / jnp.sqrt(var + eps)
    return w * scale.reshape(1, 1, 1, -1), beta - mean * scale


def make_params(key):
    ks = jax.random.split(key, 16)

    def nrm(k, shape, s=0.1):
        return jax.random.normal(k, shape, jnp.float32) * s

    def bn(k, c):
        k1, k2, k3, k4 = jax.random.split(k, 4)
        gamma = 1.0 + 0.1 * jax.random.normal(k1, (c,), jnp.float32)
        beta = 0.1 * jax.random.normal(k2, (c,), jnp.float32)
        mean = 0.1 * jax.random.normal(k3, (c,), jnp.float32)
        var = jnp.abs(1.0 + 0.1 * jax.random.normal(k4, (c,), jnp.float32))
        return gamma, beta, mean, var

    p = {}
    w = nrm(ks[0], (3, 3, 3, 32))
    p["stem_w"], p["stem_b"] = fold_bn(w, *bn(ks[1], 32))          # stem 3x3 s2
    w = nrm(ks[2], (3, 3, 32, 64))
    p["exp_w"], p["exp_b"] = fold_bn(w, *bn(ks[3], 64))            # expand 3x3 s1
    w = nrm(ks[4], (1, 1, 64, 32))
    p["prj_w"], p["prj_b"] = fold_bn(w, *bn(ks[5], 32))            # project 1x1
    w = nrm(ks[6], (1, 1, 32, 128))
    p["head_w"], p["head_b"] = fold_bn(w, *bn(ks[7], 128))         # conv_head 1x1
    p["cls_w"] = nrm(ks[8], (128, 2))
    p["cls_b"] = nrm(ks[9], (2,))
    return p


def pack_params(p):
    def pad2(w, rows, cols):
        r, c = w.shape
        return jnp.pad(w, ((0, rows - r), (0, cols - c)))

    def padb(b):
        return jnp.pad(b, (0, C_PAD - b.shape[0])).reshape(1, C_PAD).astype(jnp.float32)

    pk = {}
    pk["w_stem"] = pad2(p["stem_w"].reshape(27, 32), STEM_K_PAD, C_PAD).astype(jnp.bfloat16)
    pk["b_stem"] = padb(p["stem_b"])
    # expand weights packed for the single K = 9*C contraction: rows = tap*C + cin
    w_exp = p["exp_w"].reshape(EXP_TAPS, 32, 64)
    w_exp = jnp.pad(w_exp, ((0, 0), (0, C_PAD - 32), (0, C_PAD - 64)))
    pk["w_exp"] = w_exp.reshape(EXP_TAPS * C_PAD, C_PAD).astype(jnp.bfloat16)
    pk["b_exp"] = padb(p["exp_b"])
    pk["w_prj"] = pad2(p["prj_w"].reshape(64, 32), C_PAD, C_PAD).astype(jnp.bfloat16)
    pk["b_prj"] = padb(p["prj_b"])
    pk["w_head"] = pad2(p["head_w"].reshape(32, 128), C_PAD, C_PAD).astype(jnp.bfloat16)
    pk["b_head"] = padb(p["head_b"])
    pk["w_cls"] = pad2(p["cls_w"], C_PAD, C_PAD).astype(jnp.bfloat16)
    b_cls = jnp.full((C_PAD,), NEG_BIAS, jnp.float32).at[:NUM_CLASSES].set(p["cls_b"])
    pk["b_cls"] = b_cls.reshape(1, C_PAD)
    return pk


# ----------------------------------------------------------------------------
# Forward (mirrors TimmModel.forward: backbone -> softmax over dim=1)
# ----------------------------------------------------------------------------
@jax.jit
def timm_model_forward(x_nchw, pk):
    x = jnp.transpose(x_nchw, (0, 2, 3, 1)).astype(jnp.float32)   # NCHW -> NHWC
    cols, B, Ho, Wo = stem_im2col(x)
    return fused_forward(cols, pk, B=B, Ho=Ho, Wo=Wo)


if __name__ == "__main__":
    key = jax.random.PRNGKey(0)
    k_x, k_p = jax.random.split(key)
    x = jax.random.normal(k_x, (2, 3, 16, 16), jnp.float32)       # NCHW, like PyTorch
    params = make_params(k_p)
    packed = pack_params(params)

    out = timm_model_forward(x, packed)
    out = jax.block_until_ready(out)

    assert out.shape == (2, NUM_CLASSES)
    assert bool(jnp.allclose(jnp.sum(out, axis=1), 1.0, atol=1e-5))
    print("KERNEL_OK")
</pallas_src>

<mosaic_0001>
module attributes {stable_mosaic.version = 11 : i64} {
  func.func @_fused_kernel(%arg0: i32, %arg1: memref<1x64x32xbf16, #tpu.memory_space<vmem>>, %arg2: memref<32x128xbf16, #tpu.memory_space<vmem>>, %arg3: memref<1x128xf32, #tpu.memory_space<vmem>>, %arg4: memref<1152x128xbf16, #tpu.memory_space<vmem>>, %arg5: memref<1x128xf32, #tpu.memory_space<vmem>>, %arg6: memref<128x128xbf16, #tpu.memory_space<vmem>>, %arg7: memref<1x128xf32, #tpu.memory_space<vmem>>, %arg8: memref<128x128xbf16, #tpu.memory_space<vmem>>, %arg9: memref<1x128xf32, #tpu.memory_space<vmem>>, %arg10: memref<128x128xbf16, #tpu.memory_space<vmem>>, %arg11: memref<1x128xf32, #tpu.memory_space<vmem>>, %arg12: memref<1x1x128xf32, #tpu.memory_space<vmem>>, %arg13: memref<10x16x128xf32, #tpu.memory_space<vmem>>, %arg14: memref<64x1152xbf16, #tpu.memory_space<vmem>>) attributes {dimension_semantics = [#tpu.dimension_semantics<parallel>], iteration_bounds = array<i64: 2>, scalar_prefetch = 0 : i64, scratch_operands = 2 : i64, tpu.core_type = #tpu.core_type<tc>, window_params = [{transform_indices = @transform_0, window_bounds = array<i64: 1, 64, 32>}, {pipeline_mode = #tpu.pipeline_mode<synchronous>, transform_indices = @transform_1, window_bounds = array<i64: 32, 128>}, {pipeline_mode = #tpu.pipeline_mode<synchronous>, transform_indices = @transform_2, window_bounds = array<i64: 1, 128>}, {pipeline_mode = #tpu.pipeline_mode<synchronous>, transform_indices = @transform_3, window_bounds = array<i64: 1152, 128>}, {pipeline_mode = #tpu.pipeline_mode<synchronous>, transform_indices = @transform_4, window_bounds = array<i64: 1, 128>}, {pipeline_mode = #tpu.pipeline_mode<synchronous>, transform_indices = @transform_5, window_bounds = array<i64: 128, 128>}, {pipeline_mode = #tpu.pipeline_mode<synchronous>, transform_indices = @transform_6, window_bounds = array<i64: 1, 128>}, {pipeline_mode = #tpu.pipeline_mode<synchronous>, transform_indices = @transform_7, window_bounds = array<i64: 128, 128>}, {pipeline_mode = #tpu.pipeline_mode<synchronous>, transform_indices = @transform_8, window_bounds = array<i64: 1, 128>}, {pipeline_mode = #tpu.pipeline_mode<synchronous>, transform_indices = @transform_9, window_bounds = array<i64: 128, 128>}, {pipeline_mode = #tpu.pipeline_mode<synchronous>, transform_indices = @transform_10, window_bounds = array<i64: 1, 128>}, {transform_indices = @transform_11, window_bounds = array<i64: 1, 1, 128>}]} {
    %c0 = arith.constant 0 : index
    %c0_0 = arith.constant 0 : index
    %c0_1 = arith.constant 0 : index
    %0 = vector.load %arg1[%c0, %c0_0, %c0_1] : memref<1x64x32xbf16, #tpu.memory_space<vmem>>, vector<1x64x32xbf16>
    %1 = vector.shape_cast %0 : vector<1x64x32xbf16> to vector<64x32xbf16>
    %c0_2 = arith.constant 0 : index
    %c0_3 = arith.constant 0 : index
    %2 = vector.load %arg2[%c0_2, %c0_3] : memref<32x128xbf16, #tpu.memory_space<vmem>>, vector<32x128xbf16>
    %cst = arith.constant dense<0.000000e+00> : vector<64x128xf32>
    %3 = tpu.matmul %1, %2, %cst {dimension_numbers = #tpu.dot_dimension_numbers<[1], [0], [0], [1], [0, 0, 1, 1], [], []>} : vector<64x32xbf16>, vector<32x128xbf16>, vector<64x128xf32> -> vector<64x128xf32>
    %c0_4 = arith.constant 0 : index
    %c0_5 = arith.constant 0 : index
    %4 = vector.load %arg3[%c0_4, %c0_5] : memref<1x128xf32, #tpu.memory_space<vmem>>, vector<1x128xf32>
    %5 = vector.broadcast %4 : vector<1x128xf32> to vector<64x128xf32>
    %6 = arith.addf %3, %5 : vector<64x128xf32>
    %7 = arith.negf %6 : vector<64x128xf32>
    %8 = math.exp %7 : vector<64x128xf32>
    %cst_6 = arith.constant 1.000000e+00 : f32
    %9 = vector.broadcast %cst_6 : f32 to vector<64x128xf32>
    %10 = arith.addf %9, %8 : vector<64x128xf32>
    %11 = arith.divf %9, %10 : vector<64x128xf32>
    %12 = arith.mulf %6, %11 : vector<64x128xf32>
    %cst_7 = arith.constant 0.000000e+00 : f32
    %13 = vector.broadcast %cst_7 : f32 to vector<1x16x128xf32>
    %c0_8 = arith.constant 0 : index
    %c0_9 = arith.constant 0 : index
    %c0_10 = arith.constant 0 : index
    %14 = vector.load %arg13[%c0_8, %c0_9, %c0_10] : memref<10x16x128xf32, #tpu.memory_space<vmem>>, vector<1x16x128xf32>
    tpu.vector_store %arg13[%c0_8, %c0_9, %c0_10], %13 {strides = array<i32>} : memref<10x16x128xf32, #tpu.memory_space<vmem>>, vector<1x16x128xf32>,
    %cst_11 = arith.constant 0.000000e+00 : f32
    %15 = vector.broadcast %cst_11 : f32 to vector<1x16x128xf32>
    %c9 = arith.constant 9 : index
    %c0_12 = arith.constant 0 : index
    %c0_13 = arith.constant 0 : index
    %16 = vector.load %arg13[%c9, %c0_12, %c0_13] : memref<10x16x128xf32, #tpu.memory_space<vmem>>, vector<1x16x128xf32>
    tpu.vector_store %arg13[%c9, %c0_12, %c0_13], %15 {strides = array<i32>} : memref<10x16x128xf32, #tpu.memory_space<vmem>>, vector<1x16x128xf32>,
    %cst_14 = arith.constant 0.000000e+00 : f32
    %17 = vector.broadcast %cst_14 : f32 to vector<10x1x128xf32>
    %c0_15 = arith.constant 0 : index
    %c0_16 = arith.constant 0 : index
    %c0_17 = arith.constant 0 : index
    %18 = vector.load %arg13[%c0_15, %c0_16, %c0_17] : memref<10x16x128xf32, #tpu.memory_space<vmem>>, vector<10x1x128xf32>
    tpu.vector_store %arg13[%c0_15, %c0_16, %c0_17], %17 {strides = array<i32>} : memref<10x16x128xf32, #tpu.memory_space<vmem>>, vector<10x1x128xf32>,
    %cst_18 = arith.constant 0.000000e+00 : f32
    %19 = vector.broadcast %cst_18 : f32 to vector<10x1x128xf32>
    %c0_19 = arith.constant 0 : index
    %c9_20 = arith.constant 9 : index
    %c0_21 = arith.constant 0 : index
    %20 = vector.load %arg13[%c0_19, %c9_20, %c0_21] : memref<10x16x128xf32, #tpu.memory_space<vmem>>, vector<10x1x128xf32>
    tpu.vector_store %arg13[%c0_19, %c9_20, %c0_21], %19 {strides = array<i32>} : memref<10x16x128xf32, #tpu.memory_space<vmem>>, vector<10x1x128xf32>,
    %21 = vector.shape_cast %12 : vector<64x128xf32> to vector<8x8x128xf32>
    %c1 = arith.constant 1 : index
    %c1_22 = arith.constant 1 : index
    %c0_23 = arith.constant 0 : index
    %22 = vector.load %arg13[%c1, %c1_22, %c0_23] : memref<10x16x128xf32, #tpu.memory_space<vmem>>, vector<8x8x128xf32>
    tpu.vector_store %arg13[%c1, %c1_22, %c0_23], %21 {strides = array<i32>} : memref<10x16x128xf32, #tpu.memory_space<vmem>>, vector<8x8x128xf32>,
    %c0_24 = arith.constant 0 : index
    %c0_25 = arith.constant 0 : index
    %c0_26 = arith.constant 0 : index
    %23 = vector.load %arg13[%c0_24, %c0_25, %c0_26] : memref<10x16x128xf32, #tpu.memory_space<vmem>>, vector<8x8x128xf32>
    %24 = vector.shape_cast %23 : vector<8x8x128xf32> to vector<64x128xf32>
    %25 = arith.truncf %24 : vector<64x128xf32> to vector<64x128xbf16>
    %c0_27 = arith.constant 0 : index
    %c0_28 = arith.constant 0 : index
    %26 = vector.load %arg14[%c0_27, %c0_28] : memref<64x1152xbf16, #tpu.memory_space<vmem>>, vector<64x128xbf16>
    tpu.vector_store %arg14[%c0_27, %c0_28], %25 {strides = array<i32>} : memref<64x1152xbf16, #tpu.memory_space<vmem>>, vector<64x128xbf16>,
    %c0_29 = arith.constant 0 : index
    %c1_30 = arith.constant 1 : index
    %c0_31 = arith.constant 0 : index
    %27 = vector.load %arg13[%c0_29, %c1_30, %c0_31] : memref<10x16x128xf32, #tpu.memory_space<vmem>>, vector<8x8x128xf32>
    %28 = vector.shape_cast %27 : vector<8x8x128xf32> to vector<64x128xf32>
    %29 = arith.truncf %28 : vector<64x128xf32> to vector<64x128xbf16>
    %c0_32 = arith.constant 0 : index
    %c128 = arith.constant 128 : index
    %30 = vector.load %arg14[%c0_32, %c128] : memref<64x1152xbf16, #tpu.memory_space<vmem>>, vector<64x128xbf16>
    tpu.vector_store %arg14[%c0_32, %c128], %29 {strides = array<i32>} : memref<64x1152xbf16, #tpu.memory_space<vmem>>, vector<64x128xbf16>,
    %c0_33 = arith.constant 0 : index
    %c2 = arith.constant 2 : index
    %c0_34 = arith.constant 0 : index
    %31 = vector.load %arg13[%c0_33, %c2, %c0_34] : memref<10x16x128xf32, #tpu.memory_space<vmem>>, vector<8x8x128xf32>
    %32 = vector.shape_cast %31 : vector<8x8x128xf32> to vector<64x128xf32>
    %33 = arith.truncf %32 : vector<64x128xf32> to vector<64x128xbf16>
    %c0_35 = arith.constant 0 : index
    %c256 = arith.constant 256 : index
    %34 = vector.load %arg14[%c0_35, %c256] : memref<64x1152xbf16, #tpu.memory_space<vmem>>, vector<64x128xbf16>
    tpu.vector_store %arg14[%c0_35, %c256], %33 {strides = array<i32>} : memref<64x1152xbf16, #tpu.memory_space<vmem>>, vector<64x128xbf16>,
    %c1_36 = arith.constant 1 : index
    %c0_37 = arith.constant 0 : index
    %c0_38 = arith.constant 0 : index
    %35 = vector.load %arg13[%c1_36, %c0_37, %c0_38] : memref<10x16x128xf32, #tpu.memory_space<vmem>>, vector<8x8x128xf32>
    %36 = vector.shape_cast %35 : vector<8x8x128xf32> to vector<64x128xf32>
    %37 = arith.truncf %36 : vector<64x128xf32> to vector<64x128xbf16>
    %c0_39 = arith.constant 0 : index
    %c384 = arith.constant 384 : index
    %38 = vector.load %arg14[%c0_39, %c384] : memref<64x1152xbf16, #tpu.memory_space<vmem>>, vector<64x128xbf16>
    tpu.vector_store %arg14[%c0_39, %c384], %37 {strides = array<i32>} : memref<64x1152xbf16, #tpu.memory_space<vmem>>, vector<64x128xbf16>,
    %c1_40 = arith.constant 1 : index
    %c1_41 = arith.constant 1 : index
    %c0_42 = arith.constant 0 : index
    %39 = vector.load %arg13[%c1_40, %c1_41, %c0_42] : memref<10x16x128xf32, #tpu.memory_space<vmem>>, vector<8x8x128xf32>
    %40 = vector.shape_cast %39 : vector<8x8x128xf32> to vector<64x128xf32>
    %41 = arith.truncf %40 : vector<64x128xf32> to vector<64x128xbf16>
    %c0_43 = arith.constant 0 : index
    %c512 = arith.constant 512 : index
    %42 = vector.load %arg14[%c0_43, %c512] : memref<64x1152xbf16, #tpu.memory_space<vmem>>, vector<64x128xbf16>
    tpu.vector_store %arg14[%c0_43, %c512], %41 {strides = array<i32>} : memref<64x1152xbf16, #tpu.memory_space<vmem>>, vector<64x128xbf16>,
    %c1_44 = arith.constant 1 : index
    %c2_45 = arith.constant 2 : index
    %c0_46 = arith.constant 0 : index
    %43 = vector.load %arg13[%c1_44, %c2_45, %c0_46] : memref<10x16x128xf32, #tpu.memory_space<vmem>>, vector<8x8x128xf32>
    %44 = vector.shape_cast %43 : vector<8x8x128xf32> to vector<64x128xf32>
    %45 = arith.truncf %44 : vector<64x128xf32> to vector<64x128xbf16>
    %c0_47 = arith.constant 0 : index
    %c640 = arith.constant 640 : index
    %46 = vector.load %arg14[%c0_47, %c640] : memref<64x1152xbf16, #tpu.memory_space<vmem>>, vector<64x128xbf16>
    tpu.vector_store %arg14[%c0_47, %c640], %45 {strides = array<i32>} : memref<64x1152xbf16, #tpu.memory_space<vmem>>, vector<64x128xbf16>,
    %c2_48 = arith.constant 2 : index
    %c0_49 = arith.constant 0 : index
    %c0_50 = arith.constant 0 : index
    %47 = vector.load %arg13[%c2_48, %c0_49, %c0_50] : memref<10x16x128xf32, #tpu.memory_space<vmem>>, vector<8x8x128xf32>
    %48 = vector.shape_cast %47 : vector<8x8x128xf32> to vector<64x128xf32>
    %49 = arith.truncf %48 : vector<64x128xf32> to vector<64x128xbf16>
    %c0_51 = arith.constant 0 : index
    %c768 = arith.constant 768 : index
    %50 = vector.load %arg14[%c0_51, %c768] : memref<64x1152xbf16, #tpu.memory_space<vmem>>, vector<64x128xbf16>
    tpu.vector_store %arg14[%c0_51, %c768], %49 {strides = array<i32>} : memref<64x1152xbf16, #tpu.memory_space<vmem>>, vector<64x128xbf16>,
    %c2_52 = arith.constant 2 : index
    %c1_53 = arith.constant 1 : index
    %c0_54 = arith.constant 0 : index
    %51 = vector.load %arg13[%c2_52, %c1_53, %c0_54] : memref<10x16x128xf32, #tpu.memory_space<vmem>>, vector<8x8x128xf32>
    %52 = vector.shape_cast %51 : vector<8x8x128xf32> to vector<64x128xf32>
    %53 = arith.truncf %52 : vector<64x128xf32> to vector<64x128xbf16>
    %c0_55 = arith.constant 0 : index
    %c896 = arith.constant 896 : index
    %54 = vector.load %arg14[%c0_55, %c896] : memref<64x1152xbf16, #tpu.memory_space<vmem>>, vector<64x128xbf16>
    tpu.vector_store %arg14[%c0_55, %c896], %53 {strides = array<i32>} : memref<64x1152xbf16, #tpu.memory_space<vmem>>, vector<64x128xbf16>,
    %c2_56 = arith.constant 2 : index
    %c2_57 = arith.constant 2 : index
    %c0_58 = arith.constant 0 : index
    %55 = vector.load %arg13[%c2_56, %c2_57, %c0_58] : memref<10x16x128xf32, #tpu.memory_space<vmem>>, vector<8x8x128xf32>
    %56 = vector.shape_cast %55 : vector<8x8x128xf32> to vector<64x128xf32>
    %57 = arith.truncf %56 : vector<64x128xf32> to vector<64x128xbf16>
    %c0_59 = arith.constant 0 : index
    %c1024 = arith.constant 1024 : index
    %58 = vector.load %arg14[%c0_59, %c1024] : memref<64x1152xbf16, #tpu.memory_space<vmem>>, vector<64x128xbf16>
    tpu.vector_store %arg14[%c0_59, %c1024], %57 {strides = array<i32>} : memref<64x1152xbf16, #tpu.memory_space<vmem>>, vector<64x128xbf16>,
    %c0_60 = arith.constant 0 : index
    %c0_61 = arith.constant 0 : index
    %59 = vector.load %arg14[%c0_60, %c0_61] : memref<64x1152xbf16, #tpu.memory_space<vmem>>, vector<64x1152xbf16>
    %c0_62 = arith.constant 0 : index
    %c0_63 = arith.constant 0 : index
    %60 = vector.load %arg4[%c0_62, %c0_63] : memref<1152x128xbf16, #tpu.memory_space<vmem>>, vector<1152x128xbf16>
    %cst_64 = arith.constant dense<0.000000e+00> : vector<64x128xf32>
    %61 = tpu.matmul %59, %60, %cst_64 {dimension_numbers = #tpu.dot_dimension_numbers<[1], [0], [0], [1], [0, 0, 1, 1], [], []>} : vector<64x1152xbf16>, vector<1152x128xbf16>, vector<64x128xf32> -> vector<64x128xf32>
    %c0_65 = arith.constant 0 : index
    %c0_66 = arith.constant 0 : index
    %62 = vector.load %arg5[%c0_65, %c0_66] : memref<1x128xf32, #tpu.memory_space<vmem>>, vector<1x128xf32>
    %63 = vector.broadcast %62 : vector<1x128xf32> to vector<64x128xf32>
    %64 = arith.addf %61, %63 : vector<64x128xf32>
    %65 = arith.negf %64 : vector<64x128xf32>
    %66 = math.exp %65 : vector<64x128xf32>
    %cst_67 = arith.constant 1.000000e+00 : f32
    %67 = vector.broadcast %cst_67 : f32 to vector<64x128xf32>
    %68 = arith.addf %67, %66 : vector<64x128xf32>
    %69 = arith.divf %67, %68 : vector<64x128xf32>
    %70 = arith.mulf %64, %69 : vector<64x128xf32>
    %71 = arith.truncf %70 : vector<64x128xf32> to vector<64x128xbf16>
    %c0_68 = arith.constant 0 : index
    %c0_69 = arith.constant 0 : index
    %72 = vector.load %arg6[%c0_68, %c0_69] : memref<128x128xbf16, #tpu.memory_space<vmem>>, vector<128x128xbf16>
    %cst_70 = arith.constant dense<0.000000e+00> : vector<64x128xf32>
    %73 = tpu.matmul %71, %72, %cst_70 {dimension_numbers = #tpu.dot_dimension_numbers<[1], [0], [0], [1], [0, 0, 1, 1], [], []>} : vector<64x128xbf16>, vector<128x128xbf16>, vector<64x128xf32> -> vector<64x128xf32>
    %c0_71 = arith.constant 0 : index
    %c0_72 = arith.constant 0 : index
    %74 = vector.load %arg7[%c0_71, %c0_72] : memref<1x128xf32, #tpu.memory_space<vmem>>, vector<1x128xf32>
    %75 = vector.broadcast %74 : vector<1x128xf32> to vector<64x128xf32>
    %76 = arith.addf %73, %75 : vector<64x128xf32>
    %77 = arith.addf %76, %12 : vector<64x128xf32>
    %78 = arith.truncf %77 : vector<64x128xf32> to vector<64x128xbf16>
    %c0_73 = arith.constant 0 : index
    %c0_74 = arith.constant 0 : index
    %79 = vector.load %arg8[%c0_73, %c0_74] : memref<128x128xbf16, #tpu.memory_space<vmem>>, vector<128x128xbf16>
    %cst_75 = arith.constant dense<0.000000e+00> : vector<64x128xf32>
    %80 = tpu.matmul %78, %79, %cst_75 {dimension_numbers = #tpu.dot_dimension_numbers<[1], [0], [0], [1], [0, 0, 1, 1], [], []>} : vector<64x128xbf16>, vector<128x128xbf16>, vector<64x128xf32> -> vector<64x128xf32>
    %c0_76 = arith.constant 0 : index
    %c0_77 = arith.constant 0 : index
    %81 = vector.load %arg9[%c0_76, %c0_77] : memref<1x128xf32, #tpu.memory_space<vmem>>, vector<1x128xf32>
    %82 = vector.broadcast %81 : vector<1x128xf32> to vector<64x128xf32>
    %83 = arith.addf %80, %82 : vector<64x128xf32>
    %84 = arith.negf %83 : vector<64x128xf32>
    %85 = math.exp %84 : vector<64x128xf32>
    %cst_78 = arith.constant 1.000000e+00 : f32
    %86 = vector.broadcast %cst_78 : f32 to vector<64x128xf32>
    %87 = arith.addf %86, %85 : vector<64x128xf32>
    %88 = arith.divf %86, %87 : vector<64x128xf32>
    %89 = arith.mulf %83, %88 : vector<64x128xf32>
    %cst_79 = arith.constant dense<0.000000e+00> : vector<128xf32>
    %90 = vector.multi_reduction <add>, %89, %cst_79 [0] : vector<64x128xf32> to vector<128xf32>
    %91 = vector.shape_cast %90 : vector<128xf32> to vector<1x128xf32>
    %cst_80 = arith.constant 6.400000e+01 : f32
    %92 = vector.broadcast %cst_80 : f32 to vector<1x128xf32>
    %93 = arith.divf %91, %92 : vector<1x128xf32>
    %94 = arith.truncf %93 : vector<1x128xf32> to vector<1x128xbf16>
    %c0_81 = arith.constant 0 : index
    %c0_82 = arith.constant 0 : index
    %95 = vector.load %arg10[%c0_81, %c0_82] : memref<128x128xbf16, #tpu.memory_space<vmem>>, vector<128x128xbf16>
    %cst_83 = arith.constant dense<0.000000e+00> : vector<1x128xf32>
    %96 = tpu.matmul %94, %95, %cst_83 {dimension_numbers = #tpu.dot_dimension_numbers<[1], [0], [0], [1], [0, 0, 1, 1], [], []>} : vector<1x128xbf16>, vector<128x128xbf16>, vector<1x128xf32> -> vector<1x128xf32>
    %c0_84 = arith.constant 0 : index
    %c0_85 = arith.constant 0 : index
    %97 = vector.load %arg11[%c0_84, %c0_85] : memref<1x128xf32, #tpu.memory_space<vmem>>, vector<1x128xf32>
    %98 = arith.addf %96, %97 : vector<1x128xf32>
    %cst_86 = arith.constant dense<0xFF800000> : vector<1xf32>
    %99 = vector.multi_reduction <maximumf>, %98, %cst_86 [1] : vector<1x128xf32> to vector<1xf32>
    %100 = vector.shape_cast %99 : vector<1xf32> to vector<1x1xf32>
    %101 = vector.broadcast %100 : vector<1x1xf32> to vector<1x128xf32>
    %102 = arith.subf %98, %101 : vector<1x128xf32>
    %103 = math.exp %102 : vector<1x128xf32>
    %cst_87 = arith.constant dense<0.000000e+00> : vector<1xf32>
    %104 = vector.multi_reduction <add>, %103, %cst_87 [1] : vector<1x128xf32> to vector<1xf32>
    %105 = vector.shape_cast %104 : vector<1xf32> to vector<1x1xf32>
    %106 = vector.broadcast %105 : vector<1x1xf32> to vector<1x128xf32>
    %107 = arith.divf %103, %106 : vector<1x128xf32>
    %c0_88 = arith.constant 0 : index
    %c0_89 = arith.constant 0 : index
    %c0_90 = arith.constant 0 : index
    %108 = vector.load %arg12[%c0_88, %c0_89, %c0_90] : memref<1x1x128xf32, #tpu.memory_space<vmem>>, vector<1x1x128xf32>
    %109 = vector.shape_cast %108 : vector<1x1x128xf32> to vector<1x128xf32>
    %110 = vector.shape_cast %107 : vector<1x128xf32> to vector<1x1x128xf32>
    tpu.vector_store %arg12[%c0_88, %c0_89, %c0_90], %110 {strides = array<i32>} : memref<1x1x128xf32, #tpu.memory_space<vmem>>, vector<1x1x128xf32>,
    return
  }
  func.func @transform_0(%arg0: i32) -> (i32, i32, i32) {
    %c0_i32 = arith.constant 0 : i32
    %c0_i32_0 = arith.constant 0 : i32
    %c0_i32_1 = arith.constant 0 : i32
    return %arg0, %c0_i32, %c0_i32_0 : i32, i32, i32
  }
  func.func @transform_1(%arg0: i32) -> (i32, i32) {
    %c0_i32 = arith.constant 0 : i32
    %c0_i32_0 = arith.constant 0 : i32
    %c0_i32_1 = arith.constant 0 : i32
    return %c0_i32, %c0_i32_0 : i32, i32
  }
  func.func @transform_2(%arg0: i32) -> (i32, i32) {
    %c0_i32 = arith.constant 0 : i32
    %c0_i32_0 = arith.constant 0 : i32
    %c0_i32_1 = arith.constant 0 : i32
    return %c0_i32, %c0_i32_0 : i32, i32
  }
  func.func @transform_3(%arg0: i32) -> (i32, i32) {
    %c0_i32 = arith.constant 0 : i32
    %c0_i32_0 = arith.constant 0 : i32
    %c0_i32_1 = arith.constant 0 : i32
    return %c0_i32, %c0_i32_0 : i32, i32
  }
  func.func @transform_4(%arg0: i32) -> (i32, i32) {
    %c0_i32 = arith.constant 0 : i32
    %c0_i32_0 = arith.constant 0 : i32
    %c0_i32_1 = arith.constant 0 : i32
    return %c0_i32, %c0_i32_0 : i32, i32
  }
  func.func @transform_5(%arg0: i32) -> (i32, i32) {
    %c0_i32 = arith.constant 0 : i32
    %c0_i32_0 = arith.constant 0 : i32
    %c0_i32_1 = arith.constant 0 : i32
    return %c0_i32, %c0_i32_0 : i32, i32
  }
  func.func @transform_6(%arg0: i32) -> (i32, i32) {
    %c0_i32 = arith.constant 0 : i32
    %c0_i32_0 = arith.constant 0 : i32
    %c0_i32_1 = arith.constant 0 : i32
    return %c0_i32, %c0_i32_0 : i32, i32
  }
  func.func @transform_7(%arg0: i32) -> (i32, i32) {
    %c0_i32 = arith.constant 0 : i32
    %c0_i32_0 = arith.constant 0 : i32
    %c0_i32_1 = arith.constant 0 : i32
    return %c0_i32, %c0_i32_0 : i32, i32
  }
  func.func @transform_8(%arg0: i32) -> (i32, i32) {
    %c0_i32 = arith.constant 0 : i32
    %c0_i32_0 = arith.constant 0 : i32
    %c0_i32_1 = arith.constant 0 : i32
    return %c0_i32, %c0_i32_0 : i32, i32
  }
  func.func @transform_9(%arg0: i32) -> (i32, i32) {
    %c0_i32 = arith.constant 0 : i32
    %c0_i32_0 = arith.constant 0 : i32
    %c0_i32_1 = arith.constant 0 : i32
    return %c0_i32, %c0_i32_0 : i32, i32
  }
  func.func @transform_10(%arg0: i32) -> (i32, i32) {
    %c0_i32 = arith.constant 0 : i32
    %c0_i32_0 = arith.constant 0 : i32
    %c0_i32_1 = arith.constant 0 : i32
    return %c0_i32, %c0_i32_0 : i32, i32
  }
  func.func @transform_11(%arg0: i32) -> (i32, i32, i32) {
    %c0_i32 = arith.constant 0 : i32
    %c0_i32_0 = arith.constant 0 : i32
    %c0_i32_1 = arith.constant 0 : i32
    return %arg0, %c0_i32, %c0_i32_0 : i32, i32, i32
  }
}

</mosaic_0001>

<bundles_post_ra>
// kernel: timm_model_forward.1
= control target key start
LH: loop header
LB: loop body
LE: loop exit
PB: predicated region body
PF: predicated region fallthrough
CT: control target
= control target key end

     0   :  { %s3666_s0 = inlined_call_operand.vmem [shape: bf16[2,64,32], index: 0, kind: input, shape index: {}]   ;;  %s3667_s1 = inlined_call_operand.vmem [shape: bf16[32,128], index: 1, kind: input, shape index: {}]   ;;  %s3668_s2 = inlined_call_operand.vmem [shape: f32[1,128], index: 2, kind: input, shape index: {}]   ;;  %s3669_s3 = inlined_call_operand.vmem [shape: bf16[1152,128], index: 3, kind: input, shape index: {}]   ;;  %s3670_s4 = inlined_call_operand.vmem [shape: f32[1,128], index: 4, kind: input, shape index: {}]   ;;  %s3671_s5 = inlined_call_operand.vmem [shape: bf16[128,128], index: 5, kind: input, shape index: {}]   ;;  %s3672_s6 = inlined_call_operand.vmem [shape: f32[1,128], index: 6, kind: input, shape index: {}]   ;;  %s3673_s7 = inlined_call_operand.vmem [shape: bf16[128,128], index: 7, kind: input, shape index: {}]   ;;  %s3674_s8 = inlined_call_operand.vmem [shape: f32[1,128], index: 8, kind: input, shape index: {}]   ;;  %s3675_s9 = inlined_call_operand.vmem [shape: bf16[128,128], index: 9, kind: input, shape index: {}]   ;;  %s3676_s10 = inlined_call_operand.vmem [shape: f32[1,128], index: 10, kind: input, shape index: {}]   ;;  %s3677_s11 = inlined_call_operand.hbm [shape: f32[2,1,128], index: 11, kind: output, shape index: {}]  }
   0x1   :  { %3678 = sst [smem:[#allocation7_spill]] %s3666_s0 }
   0x2   :  { %16 = vsyncpa [#allocation5], 0 }
   0x3   :  { %18 = vsyncpa [#allocation5 + $0x1], 0  ;;  %s3124_s17 = smov 0   ;;  %s3126_s18 = smov 0  }
   0x4   :  { %s3128_s19 = smov 0   ;;  %s3130_s20 = smov 0  }
   0x5 LB: > { %s3145_s21 = sadd.s32 4294967295, %s3059_s20   ;;  %s2295_s22 = sadd.s32 4294967294, %s3059_s20   ;;  %s3059_s20 = sphi %s3130_s20, %s3685_s20   ;;  %s3055_s19 = sphi %s3128_s19, %s3684_s19   ;;  %s3051_s18 = sphi %s3126_s18, %s3683_s18   ;;  %s3047_s17 = sphi %s3124_s17, %s3682_s17  }
   0x6   : > { %s3149_s23 = sadd.s32 1, %s3059_s20   ;;  %s267_s24 = sadd.s32 1, %s3055_s19 }
   0x7   : > { %s264_s25 = ssub.s32 %s3059_s20, %s3149_s23  ;;  %p277_p0 = scmp.ne.s32.totalorder %s3055_s19, %s3051_s18 }
   0x8   : > { %p265_p1 = scmp.eq.s32.totalorder %s264_s25, 0  ;;  %p278_p2 = scmp.eq.s32.totalorder %s3145_s21, 1 }
   0x9   : > { %p283_p3 = scmp.ne.s32.totalorder %s3051_s18, %s3047_s17  ;;  %p284_p4 = scmp.eq.s32.totalorder %s2295_s22, 1 }
   0xa   : > { %s3160_s26 = scalar_select %p265_p1, %s3055_s19, %s267_s24  }
   0xb   : > { %p3162_p5 = por %p278_p2, %p277_p0  ;;  %p3166_p6 = por %p284_p4, %p283_p3 }
   0xc   : > { %p2298_p7 = scmp.ge.s32.totalorder %s3059_s20, 1  ;;  %p340_p8 = scmp.lt.s32.totalorder %s3059_s20, 3 }
   0xe   : > { %p341_p9 = pnand %p2298_p7, %p340_p8 }
   0xf   : > { %v2795_v0 = vld [vmem:[%s3667_s1] sm:$0xff] (!%p341_p9)   ;;  %p379_p10 = scmp.lt.s32.totalorder (!%p341_p9), %s3145_s21, 1  ;;  %v2796_v1 = vld [vmem:[%s3667_s1 + $0x8] sm:$0xff] (!%p341_p9)   ;;  %vm436_vm0 = vcmask (!%p341_p9), 261120   ;;  %s3681_s0 = sld [smem:[#allocation7_spill]] (!%p341_p9)  ;;  %v2808_v13 = vld [vmem:[%s3669_s3 + $0x50] sm:$0xff] (!%p341_p9)  }
  0x10   : > { %344 = sbr.rel (%p341_p9) target bundleno = 1633 (0x661), region = 64  ;;  %2650 = vmatprep.subr.bf16.mxu0 (!%p341_p9), %v2795_v0  ;;  %v2801_v6 = vld [vmem:[%s3669_s3 + $0x40] sm:$0xff] (!%p341_p9)   ;;  %v2804_v9 = vld [vmem:[%s3669_s3 + $0x48] sm:$0xff] (!%p341_p9)   ;;  %v2810_v15 = vld [vmem:[%s3669_s3 + $0x10] sm:$0xff] (!%p341_p9)   ;;  %v3061_v23 = vmov (!%p341_p9), 0.0   ;;  %vm3062_vm1 = vmmov (!%p341_p9), 0  }
  0x11   : > { %2651 = vmatpush3.bf16.msra.mxu0 (!%p341_p9), %v2795_v0  ;;  %v2802_v7 = vld [vmem:[%s3669_s3] sm:$0xff] (!%p341_p9)   ;;  %2445 = vmatprep.subr.bf16.mxu1 (!%p341_p9), %v2801_v6  ;;  %v2806_v11 = vld [vmem:[%s3669_s3 + $0x8] sm:$0xff] (!%p341_p9)   ;;  %v2811_v16 = vld [vmem:[%s3669_s3 + $0xd0] sm:$0xff] (!%p341_p9)   ;;  %570 = vst [vmem:[#allocation2] sm:$0xff] (!%p341_p9), %v3061_v23  ;;  %vm2214_vm2 = vcmask (!%p341_p9), 1040384   ;;  %s377_s30 = sand.u32 (!%p341_p9), 1, %s3051_s18  }
  0x12   : > { %2652 = vmatprep.subr.bf16.mxu0 (!%p341_p9), %v2796_v1  ;;  %2446 = vmatpush3.bf16.msra.mxu1 (!%p341_p9), %v2802_v7  ;;  %v2803_v8 = vld [vmem:[%s3669_s3 + $0xc0] sm:$0xff] (!%p341_p9)   ;;  %v2807_v12 = vld [vmem:[%s3669_s3 + $0xc8] sm:$0xff] (!%p341_p9)   ;;  %v2812_v17 = vld [vmem:[%s3669_s3 + $0x58] sm:$0xff] (!%p341_p9)   ;;  %571 = vst [vmem:[#allocation2 + $0x8] sm:$0xff] (!%p341_p9), %v3061_v23  ;;  %s2435_s12 = sshll.u32 (!%p341_p9), %s3145_s21, 4  ;;  %s378_s13 = scalar_lea.vmem (!%p341_p9), [#allocation4], %s377_s30 }
  0x13   : > { %v2805_v10 = vld [vmem:[%s3669_s3 + $0x80] sm:$0xff] (!%p341_p9)   ;;  %2447 = vmatprep.subr.bf16.mxu1 (!%p341_p9), %v2804_v9  ;;  %v2809_v14 = vld [vmem:[%s3669_s3 + $0x88] sm:$0xff] (!%p341_p9)   ;;  %v2813_v18 = vld [vmem:[%s3669_s3 + $0x90] sm:$0xff] (!%p341_p9)   ;;  %573 = vst [vmem:[#allocation2 + $0x90] sm:$0xff] (!%p341_p9), %v3061_v23  ;;  %s3624_s22 = scalar_lea.hbm (!%p341_p9), %s3677_s11, %s2435_s12 }
  0x14   : > { %v2814_v19 = vld [vmem:[%s3669_s3 + $0x18] sm:$0xff] (!%p341_p9)   ;;  %v2816_v21 = vld [vmem:[%s3669_s3 + $0x60] sm:$0xff] (!%p341_p9)   ;;  %574 = vst [vmem:[#allocation2 + $0x98] sm:$0xff] (!%p341_p9), %v3061_v23  ;;  %576 = vst [vmem:[#allocation2 + $0x10] sm:$0x1] (!%p341_p9), %v3061_v23 }
  0x15   : > { %2653 = vmatpush3.bf16.msra.mxu0 (!%p341_p9), %v2796_v1  ;;  %v2815_v20 = vld [vmem:[%s3669_s3 + $0xd8] sm:$0xff] (!%p341_p9)   ;;  %577 = vst [vmem:[#allocation2 + $0x20] sm:$0x1] (!%p341_p9), %v3061_v23  ;;  %578 = vst [vmem:[#allocation2 + $0x30] sm:$0x1] (!%p341_p9), %v3061_v23  ;;  %v2818_v24 = vld [vmem:[%s3669_s3 + $0x20] sm:$0xff] (!%p341_p9)  }
  0x16   : > { %2485 = vmatprep.subr.bf16.mxu0 (!%p341_p9), %v2803_v8  ;;  %2448 = vmatpush3.bf16.msra.mxu1 (!%p341_p9), %v2806_v11  ;;  %v2817_v22 = vld [vmem:[%s3669_s3 + $0x98] sm:$0xff] (!%p341_p9)   ;;  %579 = vst [vmem:[#allocation2 + $0x40] sm:$0x1] (!%p341_p9), %v3061_v23  ;;  %580 = vst [vmem:[#allocation2 + $0x50] sm:$0x1] (!%p341_p9), %v3061_v23  ;;  %v2819_v25 = vld [vmem:[%s3669_s3 + $0xe0] sm:$0xff] (!%p341_p9)  }
  0x17   : > { %s380_s14 = scalar_select %p379_p10, %s3145_s21, 1  ;;  %2449 = vmatprep.subr.bf16.mxu1 %v2808_v13  ;;  %581 = vst [vmem:[#allocation2 + $0x60] sm:$0x1] %v3061_v23  ;;  %582 = vst [vmem:[#allocation2 + $0x70] sm:$0x1] %v3061_v23  ;;  %v2820_v26 = vld [vmem:[%s3669_s3 + $0x68] sm:$0xff]  }
  0x18   : > { %583 = vst [vmem:[#allocation2 + $0x80] sm:$0x1] %v3061_v23  ;;  %586 = vst [vmem:[#allocation2 + $0x19] sm:$0x1] %v3061_v23  ;;  %v2821_v27 = vld [vmem:[%s3669_s3 + $0xa0] sm:$0xff]   ;;  %v2822_v28 = vld [vmem:[%s3669_s3 + $0x28] sm:$0xff]  }
  0x19   : > { %s2438_s15 = sshll.u32 %s380_s14, 5  ;;  %587 = vst [vmem:[#allocation2 + $0x29] sm:$0x1] %v3061_v23  ;;  %588 = vst [vmem:[#allocation2 + $0x39] sm:$0x1] %v3061_v23  ;;  %v2823_v29 = vld [vmem:[%s3669_s3 + $0xe8] sm:$0xff]  }
  0x1a   : > { %s383_s24 = scalar_lea.vmem %s3681_s0, %s2438_s15  ;;  %2450 = vmatpush3.bf16.msra.mxu1 %v2810_v15  ;;  %589 = vst [vmem:[#allocation2 + $0x49] sm:$0x1] %v3061_v23  ;;  %590 = vst [vmem:[#allocation2 + $0x59] sm:$0x1] %v3061_v23  ;;  %v2824_v30 = vld [vmem:[%s3669_s3 + $0x70] sm:$0xff]   ;;  %v2825_v31 = vld [vmem:[%s3669_s3 + $0xa8] sm:$0xff]  }
  0x1b   : > { %v2797_v2 = vld [vmem:[%s383_s24] sm:$0xff]   ;;  %v2798_v3 = vld [vmem:[%s383_s24 + $0x8] sm:$0xff]   ;;  %v2799_v4 = vld [vmem:[%s383_s24 + $0x10] sm:$0xff]   ;;  %2451 = vmatprep.subr.bf16.mxu1 %v2812_v17  ;;  %591 = vst [vmem:[#allocation2 + $0x69] sm:$0x1] %v3061_v23  ;;  %s2240_s14 = sshll.u32 %s378_s13, 4  ;;  %s3626_s14 = int_to_ptr.vmem [resolvable:$true] %s2240_s14 }
  0x1c   : > { %2654 = vmatprep.mubr.msk.bf16.mxu0 %vm436_vm0, %v2797_v2  ;;  %v2800_v5 = vld [vmem:[%s383_s24 + $0x18] sm:$0xff]   ;;  %592 = vst [vmem:[#allocation2 + $0x79] sm:$0x1] %v3061_v23  ;;  %593 = vst [vmem:[#allocation2 + $0x89] sm:$0x1] %v3061_v23  ;;  %v2826_v32 = vld [vmem:[%s3669_s3 + $0x30] sm:$0xff]  }
  0x1d   : > { %2655 = vmatmul.mubr.msk.bf16.vlgmr.msra.gmra.mrb[0].mxu0 %vm436_vm0, %v2798_v3  ;;  %585 = vst [vmem:[#allocation2 + $0x9] sm:$0x1] %v3061_v23  ;;  %575 = vst [vmem:[#allocation2] sm:$0x1] %v3061_v23  ;;  %v2827_v33 = vld [vmem:[%s3669_s3 + $0xf0] sm:$0xff]   ;;  %v2828_v34 = vld [vmem:[%s3669_s3 + $0x78] sm:$0xff]  }
  0x1e   : > { %2658 = vmatprep.mubr.msk.bf16.mxu0 %vm436_vm0, %v2799_v4  ;;  %2486 = vmatpush3.bf16.msra.mxu0 %v2805_v10  ;;  %584 = vst [vmem:[#allocation2 + $0x90] sm:$0x1] %v3061_v23  ;;  %594 = vst [vmem:[#allocation2 + $0x99] sm:$0x1] %v3061_v23  ;;  %v2829_v35 = vld [vmem:[%s3669_s3 + $0xb0] sm:$0xff]   ;;  %v2830_v36 = vld [vmem:[%s3669_s3 + $0x38] sm:$0xff]  }
  0x1f   : > { %2487 = vmatprep.subr.bf16.mxu0 %v2807_v12  ;;  %2452 = vmatpush3.bf16.msra.mxu1 %v2814_v19  ;;  %v2831_v37 = vld [vmem:[%s3669_s3 + $0xf8] sm:$0xff]   ;;  %v2833_v39 = vld [vmem:[%s3669_s3 + $0x140] sm:$0xff]   ;;  %s2228_s24 = scalar_lea.sflag [#allocation5], %s377_s30  ;;  %s2997_s25 = scalar_lea.vmem %s3626_s14, 16 }
  0x20   : > { %2453 = vmatprep.subr.bf16.mxu1 %v2816_v21  ;;  %v2832_v38 = vld [vmem:[%s3669_s3 + $0xb8] sm:$0xff]   ;;  %v2835_v40 = vld [vmem:[%s3669_s3 + $0x1c0] sm:$0xff]   ;;  %p2998_p11 = scmp.ne.s32.totalorder %s3626_s14, %s2997_s25  ;;  %s3063_s21 = smov [#allocation4]  }
  0x21   : > { %v2301_v41 = vld [vmem:[%s3668_s2] ss:$0 sm:$0xff]  ;;  %v620_v21 = vld [vmem:[#allocation2 + $0x1] sm:$0xff]  ;;  %s3001_s29 = sshll.u32 %s3063_s21, 4  ;;  %s3002_s29 = int_to_ptr.vmem [resolvable:$false] %s3001_s29 }
  0x22   : > { %2488 = vmatpush3.bf16.msra.mxu0 %v2809_v14  ;;  %p2999_p12 = pnand %p2998_p11, %p3162_p5  ;;  %s3003_s0 = scalar_lea.vmem %s3002_s29, 32 }
  0x23   : > { %2489 = vmatprep.subr.bf16.mxu0 %v2811_v16  ;;  %2454 = vmatpush3.bf16.msra.mxu1 %v2818_v24  ;;  %p3004_p0 = scmp.lt.s32.totalorder %s3626_s14, %s3002_s29  ;;  %p3005_p1 = scmp.lt.s32.totalorder %s3003_s0, %s2997_s25 }
  0x24   : > { %2455 = vmatprep.subr.bf16.mxu1 %v2820_v26  ;;  %p3000_p13 = pneg %p2999_p12 }
  0x25   : > { %2659 = vmatmul.mubr.msk.bf16.gmra.mrb[4].mxu0 %vm436_vm0, %v2800_v5  ;;  %p3006_p2 = por %p3005_p1, %p3004_p0 }
  0x26   : > { %2490 = vmatpush3.bf16.msra.mxu0 %v2813_v18 }
  0x27   : > { %2491 = vmatprep.subr.bf16.mxu0 %v2815_v20  ;;  %2456 = vmatpush3.bf16.msra.mxu1 %v2822_v28  ;;  %p3007_p3 = pnand %p3006_p2, %p3000_p13 }
  0x28   : > { %2457 = vmatprep.subr.bf16.mxu1 %v2824_v30 }
  0x2a   : > { %2492 = vmatpush3.bf16.msra.mxu0 %v2817_v22 }
  0x2b   : > { %2493 = vmatprep.subr.bf16.mxu0 %v2819_v25  ;;  %2458 = vmatpush3.bf16.msra.mxu1 %v2826_v32  ;;  %v604_v32 = vld [vmem:[#allocation2] sm:$0xff] }
  0x2c   : > { %2459 = vmatprep.subr.bf16.mxu1 %v2828_v34 }
  0x2e   : > { %2494 = vmatpush3.bf16.msra.mxu0 %v2821_v27 }
  0x2f   : > { %2495 = vmatprep.subr.bf16.mxu0 %v2823_v29  ;;  %2460 = vmatpush3.bf16.msra.mxu1 %v2830_v36 }
  0x30   : > { %2525 = vmatprep.subr.bf16.mxu1 %v2833_v39 }
  0x32   : > { %2496 = vmatpush3.bf16.msra.mxu0 %v2825_v31 }
  0x33   : > { %2497 = vmatprep.subr.bf16.mxu0 %v2827_v33 }
  0x36   : > { %2498 = vmatpush3.bf16.msra.mxu0 %v2829_v35 }
  0x37   : > { %2499 = vmatprep.subr.bf16.mxu0 %v2831_v37 }
  0x3a   : > { %2500 = vmatpush3.bf16.msra.mxu0 %v2832_v38  ;;  %v2834_v38 = vld [vmem:[%s3669_s3 + $0x100] sm:$0xff]  }
  0x3b   : > { %2565 = vmatprep.subr.bf16.mxu0 %v2835_v40 }
  0xf0   : > { %v2656_v42 = vpop.f32.mrb[0].mxu0 }
  0xf1   : > { %v492_v43 = vadd.f32 %v2656_v42, %v2301_v41  ;;  %v483_v44 = vpop.f32.mrb[1].mxu0 }
  0xf2   : > { %v484_v45 = vadd.f32 %v2301_v41, %v483_v44  ;;  %v2657_v46 = vpop.f32.mrb[2].mxu0 }
  0xf3   : > { %v2314_v47 = vmul.f32 -1.442695, %v492_v43  ;;  %v495_v48 = vadd.f32 %v2657_v46, %v2301_v41  ;;  %v486_v49 = vpop.f32.mrb[3].mxu0 }
  0xf4   : > { %v2312_v50 = vmul.f32 -1.442695, %v484_v45  ;;  %v487_v51 = vadd.f32 %v2301_v41, %v486_v49 }
  0xf5   : > { %2897 = vpow2.f32 %v2314_v47  ;;  %v2315_v52 = vmul.f32 -1.442695, %v495_v48 }
  0xf6   : > { %2899 = vpow2.f32 %v2312_v50  ;;  %v2313_v53 = vmul.f32 -1.442695, %v487_v51 }
  0xf7   : > { %2901 = vpow2.f32 %v2315_v52  ;;  %v2839_v52 = vld [vmem:[%s3669_s3 + $0x1c8] sm:$0xff]  }
  0xf8   : > { %2903 = vpow2.f32 %v2313_v53  ;;  %v2660_v54 = vpop.f32.mrb[4].mxu0 }
  0xf9   : > { %v508_v55 = vadd.f32 %v2660_v54, %v2301_v41  ;;  %v499_v56 = vpop.f32.mrb[5].mxu0  ;;  %v2840_v54 = vld [vmem:[%s3669_s3 + $0x150] sm:$0xff]  }
  0xfa   : > { %v500_v57 = vadd.f32 %v2301_v41, %v499_v56  ;;  %v2661_v58 = vpop.f32.mrb[6].mxu0  ;;  %v2842_v56 = vld [vmem:[%s3669_s3 + $0x110] sm:$0xff]  }
  0xfb   : > { %v2318_v59 = vmul.f32 -1.442695, %v508_v55  ;;  %v511_v60 = vadd.f32 %v2661_v58, %v2301_v41  ;;  %v502_v61 = vpop.f32.mrb[7].mxu0 }
  0xfc   : > { %v2316_v62 = vmul.f32 -1.442695, %v500_v57  ;;  %v503_v63 = vadd.f32 %v2301_v41, %v502_v61  ;;  %v636_v41 = vld [vmem:[#allocation2 + $0x2] sm:$0xff] }
  0xfd   : > { %2905 = vpow2.f32 %v2318_v59  ;;  %v2319_v0 = vmul.f32 -1.442695, %v511_v60  ;;  %v2843_v59 = vld [vmem:[%s3669_s3 + $0x1d0] sm:$0xff]  }
  0xfe   : > { %2907 = vpow2.f32 %v2316_v62  ;;  %v2317_v1 = vmul.f32 -1.442695, %v503_v63 }
  0xff   : > { %v2898_v2 = vpop.eup %2897  ;;  %2909 = vpow2.f32 %v2319_v0  ;;  %v2845_v0 = vld [vmem:[%s3669_s3 + $0x190] sm:$0xff]  }
 0x100   : > { %v2900_v3 = vpop.eup %2899  ;;  %v540_v4 = vadd.f32 1.0, %v2898_v2  ;;  %2911 = vpow2.f32 %v2317_v1 }
 0x101   : > { %v2902_v5 = vpop.eup %2901  ;;  %v538_v6 = vadd.f32 1.0, %v2900_v3  ;;  %v2846_v3 = vld [vmem:[%s3669_s3 + $0x118] sm:$0xff]  }
 0x102   : > { %v2904_v7 = vpop.eup %2903  ;;  %2913 = vrcp.f32 %v540_v4  ;;  %v541_v8 = vadd.f32 1.0, %v2902_v5  ;;  %v2847_v4 = vld [vmem:[%s3669_s3 + $0x1d8] sm:$0xff]  }
 0x103   : > { %2915 = vrcp.f32 %v538_v6  ;;  %v539_v9 = vadd.f32 1.0, %v2904_v7  ;;  %v2848_v6 = vld [vmem:[%s3669_s3 + $0x160] sm:$0xff]   ;;  %v2849_v7 = vld [vmem:[%s3669_s3 + $0x198] sm:$0xff]  }
 0x104   : > { %2917 = vrcp.f32 %v541_v8  ;;  %v2850_v8 = vld [vmem:[%s3669_s3 + $0x120] sm:$0xff]  }
 0x105   : > { %2919 = vrcp.f32 %v539_v9 }
 0x107   : > { %v2906_v10 = vpop.eup %2905 }
 0x108   : > { %v2908_v11 = vpop.eup %2907  ;;  %v544_v12 = vadd.f32 1.0, %v2906_v10 }
 0x109   : > { %v2910_v13 = vpop.eup %2909  ;;  %v542_v14 = vadd.f32 1.0, %v2908_v11  ;;  %v2851_v11 = vld [vmem:[%s3669_s3 + $0x1e0] sm:$0xff]  }
 0x10a   : > { %v2912_v15 = vpop.eup %2911  ;;  %2921 = vrcp.f32 %v544_v12  ;;  %v545_v16 = vadd.f32 1.0, %v2910_v13  ;;  %v2852_v12 = vld [vmem:[%s3669_s3 + $0x168] sm:$0xff]  }
 0x10b   : > { %2923 = vrcp.f32 %v542_v14  ;;  %v543_v17 = vadd.f32 1.0, %v2912_v15 }
 0x10c   : > { %v2914_v18 = vpop.eup %2913  ;;  %2925 = vrcp.f32 %v545_v16  ;;  %v2853_v16 = vld [vmem:[%s3669_s3 + $0x1a0] sm:$0xff]  }
 0x10d   : > { %v2916_v19 = vpop.eup %2915  ;;  %v3312_v20 = vmul.f32 %v2914_v18, %v492_v43  ;;  %2927 = vrcp.f32 %v543_v17  ;;  %v2836_v43 = vld [vmem:[%s3669_s3 + $0x148] sm:$0xff]  }
 0x10e   : > { %v2918_v22 = vpop.eup %2917  ;;  %v3314_v24 = vmul.f32 %v2916_v19, %v484_v45  ;;  %v2854_v19 = vld [vmem:[%s3669_s3 + $0x128] sm:$0xff]  }
 0x10f   : > { %v2920_v25 = vpop.eup %2919  ;;  %598 = vst [vmem:[#allocation2 + $0x31] sm:$0xff] %v3312_v20  ;;  %v3317_v26 = vmul.f32 %v2918_v22, %v495_v48  ;;  %v2837_v48 = vld [vmem:[%s3669_s3 + $0x180] sm:$0xff]  }
 0x110   : > { %596 = vst [vmem:[#allocation2 + $0x11] sm:$0xff] %v3314_v24  ;;  %v3320_v27 = vmul.f32 %v2920_v25, %v487_v51  ;;  %v628_v28 = vpack.c.bf16 %v3314_v24, %v620_v21  ;;  %v2838_v51 = vld [vmem:[%s3669_s3 + $0x108] sm:$0xff]   ;;  %v2856_v25 = vld [vmem:[%s3669_s3 + $0x170] sm:$0xff]  }
 0x111   : > { %599 = vst [vmem:[#allocation2 + $0x41] sm:$0xff] %v3317_v26  ;;  %v2855_v21 = vld [vmem:[%s3669_s3 + $0x1e8] sm:$0xff]  }
 0x112   : > { %597 = vst [vmem:[#allocation2 + $0x21] sm:$0xff] %v3320_v27  ;;  %1400 = vmatprep.mubr.bf16.mxu1 %v628_v28  ;;  %v3346_v44 = vpack.c.bf16 %v3312_v20, %v3320_v27  ;;  %v2857_v28 = vld [vmem:[%s3669_s3 + $0x1a8] sm:$0xff]  }
 0x114   : > { %v2922_v29 = vpop.eup %2921 }
 0x115   : > { %v2924_v30 = vpop.eup %2923  ;;  %v3325_v31 = vmul.f32 %v2922_v29, %v508_v55  ;;  %v2841_v55 = vld [vmem:[%s3669_s3 + $0x188] sm:$0xff]   ;;  %v2858_v29 = vld [vmem:[%s3669_s3 + $0x130] sm:$0xff]  }
 0x116   : > { %v2926_v33 = vpop.eup %2925  ;;  %v3327_v34 = vmul.f32 %v2924_v30, %v500_v57  ;;  %v654_v50 = vld [vmem:[#allocation2 + $0x30] sm:$0xff] }
 0x117   : > { %v2928_v35 = vpop.eup %2927  ;;  %602 = vst [vmem:[#allocation2 + $0x71] sm:$0xff] %v3325_v31  ;;  %v3330_v36 = vmul.f32 %v2926_v33, %v511_v60  ;;  %v605_v37 = vld [vmem:[#allocation2 + $0x10] sm:$0xff]  ;;  %v2844_v60 = vld [vmem:[%s3669_s3 + $0x158] sm:$0xff]  }
 0x118   : > { %600 = vst [vmem:[#allocation2 + $0x51] sm:$0xff] %v3327_v34  ;;  %v3336_v39 = vmul.f32 %v2928_v35, %v503_v63  ;;  %v612_v40 = vpack.c.bf16 %v605_v37, %v604_v32  ;;  %v3338_v42 = vld [vmem:[#allocation2 + $0x12] sm:$0xff]  ;;  %v655_v46 = vld [vmem:[#allocation2 + $0x40] sm:$0xff]  ;;  %v3381_v61 = vpack.c.bf16 %v3327_v34, %v3317_v26 }
 0x119   : > { %603 = vst [vmem:[#allocation2 + $0x81] sm:$0xff] %v3330_v36  ;;  %v653_v45 = vld [vmem:[#allocation2 + $0x20] sm:$0xff]  ;;  %v644_v49 = vpack.c.bf16 %v3338_v42, %v636_v41  ;;  %v661_v53 = vpack.c.bf16 %v655_v46, %v654_v50  ;;  %v3384_v63 = vld [vmem:[#allocation2 + $0x32] sm:$0xff] }
 0x11a   : > { %601 = vst [vmem:[#allocation2 + $0x61] sm:$0xff] %v3336_v39  ;;  %1401 = vmatmul.mubr.bf16.vlgmr.msra.gmra.mrb[0].mxu1 %v612_v40  ;;  %v660_v47 = vpack.c.bf16 %v653_v45, %v605_v37  ;;  %v3369_v57 = vpack.c.bf16 %v654_v50, %v653_v45  ;;  %v3371_v58 = vld [vmem:[#allocation2 + $0x22] sm:$0xff]  ;;  %v3422_v13 = vpack.c.bf16 %v3325_v31, %v3336_v39  ;;  %v2859_v33 = vld [vmem:[%s3669_s3 + $0x1f0] sm:$0xff]   ;;  %v2860_v35 = vld [vmem:[%s3669_s3 + $0x178] sm:$0xff]  }
 0x11b   : > { %2526 = vmatpush3.bf16.msra.mxu1 %v2834_v38  ;;  %1408 = vmatprep.mubr.bf16.mxu1 %v3346_v44  ;;  %v3392_v1 = vpack.c.bf16 %v3384_v63, %v3371_v58  ;;  %v640_v15 = vld [vmem:[#allocation2 + $0x42] sm:$0xff]  ;;  %v692_v37 = vpack.c.bf16 %v3371_v58, %v3338_v42  ;;  %v2861_v40 = vld [vmem:[%s3669_s3 + $0x1b0] sm:$0xff]   ;;  %v2863_v45 = vld [vmem:[%s3669_s3 + $0x1f8] sm:$0xff]   ;;  %v677_v50 = vpack.c.bf16 %v3317_v26, %v3312_v20 }
 0x11c   : > { %1465 = vmatprep.mubr.bf16.mxu0 %v660_v47  ;;  %2527 = vmatprep.subr.bf16.mxu1 %v2836_v43  ;;  %v2862_v43 = vld [vmem:[%s3669_s3 + $0x138] sm:$0xff]   ;;  %v2865_v42 = vld [vmem:[%s3669_s3 + $0x200] sm:$0xff]   ;;  %v676_v47 = vpack.c.bf16 %v3320_v27, %v3314_v24 }
 0x11d   : > { %1466 = vmatmul.mubr.bf16.vlgmr.msra.gmra.mrb[8].mxu0 %v644_v49  ;;  %v693_v49 = vpack.c.bf16 %v640_v15, %v3384_v63  ;;  %v724_v58 = vld [vmem:[#allocation2 + $0x91] sm:$0xff] }
 0x11e   : > { %1473 = vmatprep.mubr.bf16.mxu0 %v661_v53  ;;  %2566 = vmatpush3.bf16.msra.mxu0 %v2837_v48  ;;  %v658_v18 = vld [vmem:[#allocation2 + $0x70] sm:$0xff]  ;;  %v2866_v48 = vld [vmem:[%s3669_s3 + $0x208] sm:$0xff]   ;;  %v2869_v53 = vld [vmem:[%s3669_s3 + $0x220] sm:$0xff]  }
 0x11f   : > { %2528 = vmatpush3.bf16.msra.mxu1 %v2838_v51  ;;  %2567 = vmatprep.subr.bf16.mxu0 %v2839_v52  ;;  %v656_v2 = vld [vmem:[#allocation2 + $0x50] sm:$0xff]  ;;  %v2868_v51 = vld [vmem:[%s3669_s3 + $0x218] sm:$0xff]  }
 0x120   : > { %2529 = vmatprep.subr.bf16.mxu1 %v2840_v54  ;;  %v3410_v9 = vpack.c.bf16 %v656_v2, %v655_v46  ;;  %v3412_v10 = vld [vmem:[#allocation2 + $0x52] sm:$0xff]  ;;  %v3424_v14 = vld [vmem:[#allocation2 + $0x80] sm:$0xff] }
 0x121   : > { %v657_v62 = vld [vmem:[#allocation2 + $0x60] sm:$0xff]  ;;  %v3432_v17 = vpack.c.bf16 %v3412_v10, %v640_v15  ;;  %v663_v22 = vpack.c.bf16 %v3424_v14, %v658_v18  ;;  %v643_v38 = vld [vmem:[#allocation2 + $0x72] sm:$0xff] }
 0x122   : > { %2568 = vmatpush3.bf16.msra.mxu0 %v2841_v55  ;;  %1409 = vmatmul.mubr.bf16.gmra.mrb[4].mxu1 %v3369_v57  ;;  %v662_v5 = vpack.c.bf16 %v657_v62, %v656_v2  ;;  %v615_v30 = vpack.c.bf16 %v658_v18, %v657_v62  ;;  %v642_v32 = vld [vmem:[#allocation2 + $0x62] sm:$0xff]  ;;  %v2864_v46 = vld [vmem:[%s3669_s3 + $0x1b8] sm:$0xff]   ;;  %v678_v55 = vpack.c.bf16 %v3336_v39, %v3327_v34  ;;  %v708_v62 = vld [vmem:[#allocation2 + $0x90] sm:$0xff] }
 0x123   : > { %2530 = vmatpush3.bf16.msra.mxu1 %v2842_v56  ;;  %1416 = vmatprep.mubr.bf16.mxu1 %v3381_v61  ;;  %v3462_v41 = vpack.c.bf16 %v643_v38, %v642_v32  ;;  %v694_v52 = vpack.c.bf16 %v642_v32, %v3412_v10  ;;  %v691_v54 = vld [vmem:[#allocation2 + $0x82] sm:$0xff]  ;;  %v2872_v63 = vld [vmem:[%s3669_s3 + $0x238] sm:$0xff]   ;;  %v2320_v18 = vld [vmem:[%s3670_s4] ss:$0 sm:$0xff] }
 0x124   : > { %2569 = vmatprep.subr.bf16.mxu0 %v2843_v59  ;;  %2531 = vmatprep.subr.bf16.mxu1 %v2844_v60  ;;  %v2870_v56 = vld [vmem:[%s3669_s3 + $0x228] sm:$0xff]   ;;  %v728_v59 = vpack.c.bf16 %v724_v58, %v3330_v36  ;;  %v2871_v60 = vld [vmem:[%s3669_s3 + $0x230] sm:$0xff]   ;;  %v2880_v10 = vld [vmem:[%s3671_s5 + $0x38] sm:$0xff]  }
 0x125   : > { %1474 = vmatmul.mubr.bf16.gmra.mrb[12].mxu0 %v3392_v1  ;;  %v740_v2 = vld [vmem:[#allocation2 + $0x92] sm:$0xff]  ;;  %v2885_v15 = vld [vmem:[%s3673_s7 + $0x20] sm:$0xff]  }
 0x126   : > { %1481 = vmatprep.mubr.bf16.mxu0 %v662_v5  ;;  %2570 = vmatpush3.bf16.msra.mxu0 %v2845_v0  ;;  %v712_v0 = vpack.c.bf16 %v708_v62, %v3424_v14  ;;  %v2875_v5 = vld [vmem:[%s3671_s5 + $0x10] sm:$0xff]   ;;  %v2884_v14 = vld [vmem:[%s3673_s7 + $0x18] sm:$0xff]  }
 0x127   : > { %2532 = vmatpush3.bf16.msra.mxu1 %v2846_v3  ;;  %2571 = vmatprep.subr.bf16.mxu0 %v2847_v4  ;;  %v744_v3 = vpack.c.bf16 %v740_v2, %v691_v54  ;;  %v2873_v4 = vld [vmem:[%s3671_s5] sm:$0xff]  }
 0x128   : > { %2533 = vmatprep.subr.bf16.mxu1 %v2848_v6  ;;  %v2876_v6 = vld [vmem:[%s3671_s5 + $0x18] sm:$0xff]  }
 0x12a   : > { %2572 = vmatpush3.bf16.msra.mxu0 %v2849_v7  ;;  %1417 = vmatmul.mubr.bf16.gmra.mrb[8].mxu1 %v3410_v9  ;;  %v2877_v7 = vld [vmem:[%s3671_s5 + $0x20] sm:$0xff]  }
 0x12b   : > { %2534 = vmatpush3.bf16.msra.mxu1 %v2850_v8  ;;  %1424 = vmatprep.mubr.bf16.mxu1 %v3422_v13  ;;  %v2878_v8 = vld [vmem:[%s3671_s5 + $0x28] sm:$0xff]  }
 0x12c   : > { %2573 = vmatprep.subr.bf16.mxu0 %v2851_v11  ;;  %2535 = vmatprep.subr.bf16.mxu1 %v2852_v12  ;;  %v2881_v11 = vld [vmem:[%s3673_s7] sm:$0xff]   ;;  %v2882_v12 = vld [vmem:[%s3673_s7 + $0x8] sm:$0xff]  }
 0x12d   : > { %1482 = vmatmul.mubr.bf16.gmra.mrb[16].mxu0 %v3432_v17 }
 0x12e   : > { %1489 = vmatprep.mubr.bf16.mxu0 %v663_v22  ;;  %2574 = vmatpush3.bf16.msra.mxu0 %v2853_v16  ;;  %v2886_v16 = vld [vmem:[%s3673_s7 + $0x28] sm:$0xff]  }
 0x12f   : > { %2536 = vmatpush3.bf16.msra.mxu1 %v2854_v19  ;;  %2575 = vmatprep.subr.bf16.mxu0 %v2855_v21 }
 0x130   : > { %2537 = vmatprep.subr.bf16.mxu1 %v2856_v25 }
 0x132   : > { %2576 = vmatpush3.bf16.msra.mxu0 %v2857_v28  ;;  %1425 = vmatmul.mubr.bf16.gmra.mrb[12].mxu1 %v615_v30 }
 0x133   : > { %2538 = vmatpush3.bf16.msra.mxu1 %v2858_v29  ;;  %1530 = vmatprep.mubr.bf16.mxu1 %v692_v37 }
 0x134   : > { %2577 = vmatprep.subr.bf16.mxu0 %v2859_v33  ;;  %2539 = vmatprep.subr.bf16.mxu1 %v2860_v35 }
 0x135   : > { %1490 = vmatmul.mubr.bf16.gmra.mrb[20].mxu0 %v3462_v41 }
 0x136   : > { %2578 = vmatpush3.bf16.msra.mxu0 %v2861_v40  ;;  %1595 = vmatprep.mubr.bf16.mxu0 %v3346_v44  ;;  %v2867_v44 = vld [vmem:[%s3669_s3 + $0x210] sm:$0xff]  }
 0x137   : > { %2540 = vmatpush3.bf16.msra.mxu1 %v2862_v43  ;;  %2579 = vmatprep.subr.bf16.mxu0 %v2863_v45 }
 0x138   : > { %2662 = vmatprep.subr.bf16.mxu1 %v2865_v42 }
 0x13a   : > { %2580 = vmatpush3.bf16.msra.mxu0 %v2864_v46  ;;  %1531 = vmatmul.mubr.bf16.vlgmr.msra.gmra.mrb[16].mxu1 %v676_v47 }
 0x13b   : > { %2663 = vmatpush3.bf16.msra.mxu1 %v2865_v42  ;;  %1538 = vmatprep.mubr.bf16.mxu1 %v693_v49 }
 0x13c   : > { %2664 = vmatprep.subr.bf16.mxu1 %v2866_v48  ;;  %2686 = vmatprep.subr.bf16.mxu0 %v2873_v4 }
 0x13d   : > { %1596 = vmatmul.mubr.bf16.vlgmr.msra.gmra.mrb[24].mxu0 %v3369_v57  ;;  %v695_v57 = vpack.c.bf16 %v691_v54, %v643_v38 }
 0x13e   : > { %1603 = vmatprep.mubr.bf16.mxu0 %v3381_v61  ;;  %v679_v61 = vpack.c.bf16 %v3330_v36, %v3325_v31  ;;  %2687 = vmatpush3.bf16.msra.mxu0 %v2873_v4 }
 0x13f   : > { %2665 = vmatpush3.bf16.msra.mxu1 %v2866_v48 }
 0x140   : > { %2666 = vmatprep.subr.bf16.mxu1 %v2867_v44 }
 0x142   : > { %1539 = vmatmul.mubr.bf16.gmra.mrb[20].mxu1 %v677_v50 }
 0x143   : > { %2667 = vmatpush3.bf16.msra.mxu1 %v2867_v44  ;;  %1546 = vmatprep.mubr.bf16.mxu1 %v694_v52 }
 0x144   : > { %2668 = vmatprep.subr.bf16.mxu1 %v2868_v51 }
 0x145   : > { %1604 = vmatmul.mubr.bf16.gmra.mrb[28].mxu0 %v3410_v9  ;;  %v2879_v9 = vld [vmem:[%s3671_s5 + $0x30] sm:$0xff]  }
 0x146   : > { %1611 = vmatprep.mubr.bf16.mxu0 %v3422_v13  ;;  %v2883_v13 = vld [vmem:[%s3673_s7 + $0x10] sm:$0xff]  }
 0x147   : > { %2669 = vmatpush3.bf16.msra.mxu1 %v2868_v51 }
 0x148   : > { %2670 = vmatprep.subr.bf16.mxu1 %v2869_v53 }
 0x14a   : > { %1547 = vmatmul.mubr.bf16.gmra.mrb[24].mxu1 %v678_v55 }
 0x14b   : > { %2671 = vmatpush3.bf16.msra.mxu1 %v2869_v53  ;;  %1554 = vmatprep.mubr.bf16.mxu1 %v695_v57 }
 0x14c   : > { %2672 = vmatprep.subr.bf16.mxu1 %v2870_v56 }
 0x14d   : > { %1612 = vmatmul.mubr.bf16.gmra.mrb[32].mxu0 %v615_v30 }
 0x14e   : > { %1619 = vmatprep.mubr.bf16.mxu0 %v728_v59 }
 0x14f   : > { %2673 = vmatpush3.bf16.msra.mxu1 %v2870_v56 }
 0x150   : > { %2674 = vmatprep.subr.bf16.mxu1 %v2871_v60 }
 0x152   : > { %1555 = vmatmul.mubr.bf16.gmra.mrb[28].mxu1 %v679_v61 }
 0x153   : > { %2675 = vmatpush3.bf16.msra.mxu1 %v2871_v60  ;;  %2678 = vmatprep.mubr.bf16.mxu1 %v3392_v1  ;;  %v2874_v1 = vld [vmem:[%s3671_s5 + $0x8] sm:$0xff]  }
 0x154   : > { %2676 = vmatprep.subr.bf16.mxu1 %v2872_v63  ;;  %2688 = vmatprep.subr.bf16.mxu0 %v2874_v1 }
 0x155   : > { %1620 = vmatmul.mubr.bf16.gmra.mrb[36].mxu0 %v712_v0 }
 0x156   : > { %2689 = vmatpush3.bf16.msra.mxu0 %v2874_v1 }
 0x157   : > { %2677 = vmatpush3.bf16.msra.mxu1 %v2872_v63  ;;  %2690 = vmatprep.subr.bf16.mxu0 %v2875_v5 }
 0x158   : > { %2710 = vmatprep.subr.bf16.mxu1 %v2881_v11 }
 0x15a   : > { %2679 = vmatmul.mubr.bf16.vlgmr.msra.gmra.mrb[32].mxu1 %v3432_v17  ;;  %2691 = vmatpush3.bf16.msra.mxu0 %v2875_v5 }
 0x15b   : > { %2682 = vmatprep.mubr.bf16.mxu1 %v3462_v41  ;;  %2692 = vmatprep.subr.bf16.mxu0 %v2876_v6 }
 0x15c   : > { %2711 = vmatpush3.bf16.msra.mxu1 %v2881_v11 }
 0x15d   : > { %2712 = vmatprep.subr.bf16.mxu1 %v2882_v12 }
 0x15e   : > { %2693 = vmatpush3.bf16.msra.mxu0 %v2876_v6 }
 0x15f   : > { %2694 = vmatprep.subr.bf16.mxu0 %v2877_v7 }
 0x160   : > { %2713 = vmatpush3.bf16.msra.mxu1 %v2882_v12 }
 0x161   : > { %2714 = vmatprep.subr.bf16.mxu1 %v2883_v13 }
 0x162   : > { %2683 = vmatmul.mubr.bf16.gmra.mrb[36].mxu1 %v744_v3  ;;  %2695 = vmatpush3.bf16.msra.mxu0 %v2877_v7 }
 0x163   : > { %2696 = vmatprep.subr.bf16.mxu0 %v2878_v8 }
 0x164   : > { %2715 = vmatpush3.bf16.msra.mxu1 %v2883_v13 }
 0x165   : > { %2716 = vmatprep.subr.bf16.mxu1 %v2884_v14 }
 0x166   : > { %2697 = vmatpush3.bf16.msra.mxu0 %v2878_v8 }
 0x167   : > { %2698 = vmatprep.subr.bf16.mxu0 %v2879_v9 }
 0x168   : > { %2717 = vmatpush3.bf16.msra.mxu1 %v2884_v14 }
 0x169   : > { %2718 = vmatprep.subr.bf16.mxu1 %v2885_v15 }
 0x16a   : > { %2699 = vmatpush3.bf16.msra.mxu0 %v2879_v9 }
 0x16b   : > { %2700 = vmatprep.subr.bf16.mxu0 %v2880_v10 }
 0x16c   : > { %2719 = vmatpush3.bf16.msra.mxu1 %v2885_v15 }
 0x16d   : > { %2720 = vmatprep.subr.bf16.mxu1 %v2886_v16 }
 0x16e   : > { %2701 = vmatpush3.bf16.msra.mxu0 %v2880_v10 }
 0x16f   : > { %2734 = vmatprep.subr.bf16.mxu0 %v3061_v23 }
 0x170   : > { %2721 = vmatpush3.bf16.msra.mxu1 %v2886_v16 }
 0x1ed   : > { %v2461_v17 = vpop.f32.mrb[0].mxu1 }
 0x1ee   : > { %v2462_v19 = vpop.f32.mrb[1].mxu1 }
 0x1ef   : > { %v2463_v21 = vadd.f32 %v2462_v19, %v2461_v17  ;;  %v2464_v22 = vpop.f32.mrb[2].mxu1 }
 0x1f0   : > { %v2501_v25 = vpop.f32.mrb[8].mxu0  ;;  %v2465_v28 = vpop.f32.mrb[3].mxu1 }
 0x1f1   : > { %v1403_v29 = vadd.f32 %v2463_v21, %v2320_v18  ;;  %v2466_v30 = vadd.f32 %v2465_v28, %v2464_v22  ;;  %v2502_v32 = vpop.f32.mrb[9].mxu0 }
 0x1f2   : > { %v2503_v33 = vadd.f32 %v2502_v32, %v2501_v25  ;;  %v2504_v35 = vpop.f32.mrb[10].mxu0 }
 0x1f3   : > { %v1406_v37 = vadd.f32 %v2466_v30, %v2320_v18  ;;  %v2505_v38 = vpop.f32.mrb[11].mxu0 }
 0x1f4   : > { %v1468_v40 = vadd.f32 %v2503_v33, %v1403_v29  ;;  %v2506_v41 = vadd.f32 %v2505_v38, %v2504_v35 }
 0x1f5   : > { %v2467_v43 = vpop.f32.mrb[4].mxu1 }
 0x1f6   : > { %v1471_v45 = vadd.f32 %v2506_v41, %v1406_v37  ;;  %v2468_v42 = vpop.f32.mrb[5].mxu1 }
 0x1f7   : > { %v2469_v46 = vadd.f32 %v2468_v42, %v2467_v43  ;;  %v2470_v47 = vpop.f32.mrb[6].mxu1 }
 0x1f8   : > { %v2507_v48 = vpop.f32.mrb[12].mxu0  ;;  %v2471_v49 = vpop.f32.mrb[7].mxu1 }
 0x1f9   : > { %v1411_v44 = vadd.f32 %v2469_v46, %v2320_v18  ;;  %v2472_v50 = vadd.f32 %v2471_v49, %v2470_v47  ;;  %v2508_v51 = vpop.f32.mrb[13].mxu0 }
 0x1fa   : > { %v2509_v52 = vadd.f32 %v2508_v51, %v2507_v48  ;;  %v2510_v53 = vpop.f32.mrb[14].mxu0 }
 0x1fb   : > { %v1414_v54 = vadd.f32 %v2472_v50, %v2320_v18  ;;  %v2511_v55 = vpop.f32.mrb[15].mxu0 }
 0x1fc   : > { %v1476_v56 = vadd.f32 %v2509_v52, %v1411_v44  ;;  %v2512_v57 = vadd.f32 %v2511_v55, %v2510_v53 }
 0x1fd   : > { %v2473_v58 = vpop.f32.mrb[8].mxu1 }
 0x1fe   : > { %v1479_v59 = vadd.f32 %v2512_v57, %v1414_v54  ;;  %v2474_v60 = vpop.f32.mrb[9].mxu1 }
 0x1ff   : > { %v2475_v61 = vadd.f32 %v2474_v60, %v2473_v58  ;;  %v2476_v62 = vpop.f32.mrb[10].mxu1 }
 0x200   : > { %v2513_v63 = vpop.f32.mrb[16].mxu0  ;;  %v2477_v0 = vpop.f32.mrb[11].mxu1 }
 0x201   : > { %v1419_v2 = vadd.f32 %v2475_v61, %v2320_v18  ;;  %v2478_v3 = vadd.f32 %v2477_v0, %v2476_v62  ;;  %v2514_v4 = vpop.f32.mrb[17].mxu0 }
 0x202   : > { %v2515_v1 = vadd.f32 %v2514_v4, %v2513_v63  ;;  %v2516_v5 = vpop.f32.mrb[18].mxu0 }
 0x203   : > { %v1422_v6 = vadd.f32 %v2478_v3, %v2320_v18  ;;  %v2517_v7 = vpop.f32.mrb[19].mxu0 }
 0x204   : > { %v1484_v8 = vadd.f32 %v2515_v1, %v1419_v2  ;;  %v2518_v9 = vadd.f32 %v2517_v7, %v2516_v5 }
 0x205   : > { %v2479_v10 = vpop.f32.mrb[12].mxu1 }
 0x206   : > { %v1487_v11 = vadd.f32 %v2518_v9, %v1422_v6  ;;  %v2480_v12 = vpop.f32.mrb[13].mxu1 }
 0x207   : > { %v2481_v13 = vadd.f32 %v2480_v12, %v2479_v10  ;;  %v2482_v14 = vpop.f32.mrb[14].mxu1 }
 0x208   : > { %v2519_v15 = vpop.f32.mrb[20].mxu0  ;;  %v2483_v16 = vpop.f32.mrb[15].mxu1 }
 0x209   : > { %v1427_v17 = vadd.f32 %v2481_v13, %v2320_v18  ;;  %v2484_v19 = vadd.f32 %v2483_v16, %v2482_v14  ;;  %v2520_v21 = vpop.f32.mrb[21].mxu0 }
 0x20a   : > { %v2521_v22 = vadd.f32 %v2520_v21, %v2519_v15  ;;  %v2522_v25 = vpop.f32.mrb[22].mxu0 }
 0x20b   : > { %v1430_v28 = vadd.f32 %v2484_v19, %v2320_v18  ;;  %v2523_v29 = vpop.f32.mrb[23].mxu0 }
 0x20c   : > { %v1492_v30 = vadd.f32 %v2521_v22, %v1427_v17  ;;  %v2524_v32 = vadd.f32 %v2523_v29, %v2522_v25 }
 0x20d   : > { %v2541_v33 = vpop.f32.mrb[16].mxu1 }
 0x20e   : > { %v1495_v35 = vadd.f32 %v2524_v32, %v1430_v28  ;;  %v2542_v37 = vpop.f32.mrb[17].mxu1 }
 0x20f   : > { %v2543_v38 = vadd.f32 %v2542_v37, %v2541_v33  ;;  %v2544_v41 = vpop.f32.mrb[18].mxu1 }
 0x210   : > { %v2581_v43 = vpop.f32.mrb[24].mxu0  ;;  %v2545_v42 = vpop.f32.mrb[19].mxu1 }
 0x211   : > { %v1533_v46 = vadd.f32 %v2543_v38, %v1468_v40  ;;  %v2546_v47 = vadd.f32 %v2545_v42, %v2544_v41  ;;  %v2582_v48 = vpop.f32.mrb[25].mxu0 }
 0x212   : > { %v2583_v49 = vadd.f32 %v2582_v48, %v2581_v43  ;;  %v2584_v44 = vpop.f32.mrb[26].mxu0 }
 0x213   : > { %v1536_v50 = vadd.f32 %v2546_v47, %v1471_v45  ;;  %v2585_v51 = vpop.f32.mrb[27].mxu0 }
 0x214   : > { %v2586_v52 = vadd.f32 %v2585_v51, %v2584_v44  ;;  %v1598_v53 = vadd.f32 %v2583_v49, %v1533_v46 }
 0x215   : > { %v2547_v18 = vpop.f32.mrb[20].mxu1 }
 0x216   : > { %v2548_v54 = vpop.f32.mrb[21].mxu1  ;;  %v1601_v55 = vadd.f32 %v2586_v52, %v1536_v50 }
 0x217   : > { %v2549_v57 = vadd.f32 %v2548_v54, %v2547_v18  ;;  %v2550_v58 = vpop.f32.mrb[22].mxu1 }
 0x218   : > { %v2587_v60 = vpop.f32.mrb[28].mxu0  ;;  %v2551_v61 = vpop.f32.mrb[23].mxu1 }
 0x219   : > { %v1541_v62 = vadd.f32 %v2549_v57, %v1476_v56  ;;  %v2552_v63 = vadd.f32 %v2551_v61, %v2550_v58  ;;  %v2588_v0 = vpop.f32.mrb[29].mxu0 }
 0x21a   : > { %v2589_v2 = vadd.f32 %v2588_v0, %v2587_v60  ;;  %v2590_v40 = vpop.f32.mrb[30].mxu0 }
 0x21b   : > { %v1544_v3 = vadd.f32 %v2552_v63, %v1479_v59  ;;  %v2591_v4 = vpop.f32.mrb[31].mxu0 }
 0x21c   : > { %v2592_v1 = vadd.f32 %v2591_v4, %v2590_v40  ;;  %v1606_v5 = vadd.f32 %v2589_v2, %v1541_v62 }
 0x21d   : > { %v2553_v45 = vpop.f32.mrb[24].mxu1 }
 0x21e   : > { %v2554_v6 = vpop.f32.mrb[25].mxu1  ;;  %v1609_v7 = vadd.f32 %v2592_v1, %v1544_v3 }
 0x21f   : > { %v2555_v9 = vadd.f32 %v2554_v6, %v2553_v45  ;;  %v2556_v10 = vpop.f32.mrb[26].mxu1 }
 0x220   : > { %v2593_v12 = vpop.f32.mrb[32].mxu0  ;;  %v2557_v13 = vpop.f32.mrb[27].mxu1 }
 0x221   : > { %v1549_v14 = vadd.f32 %v2555_v9, %v1484_v8  ;;  %v2558_v15 = vadd.f32 %v2557_v13, %v2556_v10  ;;  %v2594_v16 = vpop.f32.mrb[33].mxu0 }
 0x222   : > { %v2595_v17 = vadd.f32 %v2594_v16, %v2593_v12  ;;  %v2596_v56 = vpop.f32.mrb[34].mxu0 }
 0x223   : > { %v1552_v19 = vadd.f32 %v2558_v15, %v1487_v11  ;;  %v2597_v21 = vpop.f32.mrb[35].mxu0 }
 0x224   : > { %v2598_v22 = vadd.f32 %v2597_v21, %v2596_v56  ;;  %v1614_v25 = vadd.f32 %v2595_v17, %v1549_v14 }
 0x225   : > { %v2559_v59 = vpop.f32.mrb[28].mxu1 }
 0x226   : > { %v2560_v28 = vpop.f32.mrb[29].mxu1  ;;  %v1617_v29 = vadd.f32 %v2598_v22, %v1552_v19 }
 0x227   : > { %v2561_v32 = vadd.f32 %v2560_v28, %v2559_v59  ;;  %v2562_v33 = vpop.f32.mrb[30].mxu1 }
 0x228   : > { %v2599_v37 = vpop.f32.mrb[36].mxu0  ;;  %v2563_v38 = vpop.f32.mrb[31].mxu1 }
 0x229   : > { %v1557_v41 = vadd.f32 %v2561_v32, %v1492_v30  ;;  %v2564_v43 = vadd.f32 %v2563_v38, %v2562_v33  ;;  %v2600_v42 = vpop.f32.mrb[37].mxu0 }
 0x22a   : > { %v2601_v46 = vadd.f32 %v2600_v42, %v2599_v37  ;;  %v2602_v8 = vpop.f32.mrb[38].mxu0 }
 0x22b   : > { %v1560_v47 = vadd.f32 %v2564_v43, %v1495_v35  ;;  %v2603_v48 = vpop.f32.mrb[39].mxu0 }
 0x22c   : > { %v2604_v49 = vadd.f32 %v2603_v48, %v2602_v8  ;;  %v1622_v44 = vadd.f32 %v2601_v46, %v1557_v41 }
 0x22d   : > { %v2680_v11 = vpop.f32.mrb[32].mxu1 }
 0x22e   : > { %v1671_v50 = vadd.f32 %v2680_v11, %v1606_v5  ;;  %v1662_v51 = vpop.f32.mrb[33].mxu1  ;;  %v1625_v52 = vadd.f32 %v2604_v49, %v1560_v47 }
 0x22f   : > { %v1663_v18 = vadd.f32 %v1662_v51, %v1598_v53  ;;  %v2681_v54 = vpop.f32.mrb[34].mxu1 }
 0x230   : > { %v2395_v57 = vmul.f32 -1.442695, %v1671_v50  ;;  %v1674_v58 = vadd.f32 %v2681_v54, %v1609_v7  ;;  %v1665_v60 = vpop.f32.mrb[35].mxu1 }
 0x231   : > { %v2393_v61 = vmul.f32 -1.442695, %v1663_v18  ;;  %v1666_v62 = vadd.f32 %v1665_v60, %v1601_v55 }
 0x232   : > { %2929 = vpow2.f32 %v2395_v57  ;;  %v2396_v30 = vmul.f32 -1.442695, %v1674_v58 }
 0x233   : > { %2931 = vpow2.f32 %v2393_v61  ;;  %v2394_v63 = vmul.f32 -1.442695, %v1666_v62 }
 0x234   : > { %2933 = vpow2.f32 %v2396_v30 }
 0x235   : > { %2935 = vpow2.f32 %v2394_v63  ;;  %v2684_v35 = vpop.f32.mrb[36].mxu1 }
 0x236   : > { %v1687_v0 = vadd.f32 %v2684_v35, %v1622_v44  ;;  %v1678_v2 = vpop.f32.mrb[37].mxu1 }
 0x237   : > { %v1679_v40 = vadd.f32 %v1678_v2, %v1614_v25  ;;  %v2685_v3 = vpop.f32.mrb[38].mxu1 }
 0x238   : > { %v2399_v4 = vmul.f32 -1.442695, %v1687_v0  ;;  %v1690_v1 = vadd.f32 %v2685_v3, %v1625_v52  ;;  %v1681_v53 = vpop.f32.mrb[39].mxu1 }
 0x239   : > { %v2397_v5 = vmul.f32 -1.442695, %v1679_v40  ;;  %v1682_v45 = vadd.f32 %v1681_v53, %v1617_v29 }
 0x23a   : > { %2937 = vpow2.f32 %v2399_v4  ;;  %v2400_v6 = vmul.f32 -1.442695, %v1690_v1 }
 0x23b   : > { %2939 = vpow2.f32 %v2397_v5  ;;  %v2398_v55 = vmul.f32 -1.442695, %v1682_v45 }
 0x23c   : > { %v2930_v7 = vpop.eup %2929  ;;  %2941 = vpow2.f32 %v2400_v6 }
 0x23d   : > { %v2932_v9 = vpop.eup %2931  ;;  %v1719_v10 = vadd.f32 1.0, %v2930_v7  ;;  %2943 = vpow2.f32 %v2398_v55 }
 0x23e   : > { %v2934_v12 = vpop.eup %2933  ;;  %v1717_v13 = vadd.f32 1.0, %v2932_v9 }
 0x23f   : > { %v2936_v14 = vpop.eup %2935  ;;  %2945 = vrcp.f32 %v1719_v10  ;;  %v1720_v15 = vadd.f32 1.0, %v2934_v12 }
 0x240   : > { %2947 = vrcp.f32 %v1717_v13  ;;  %v1718_v16 = vadd.f32 1.0, %v2936_v14 }
 0x241   : > { %2949 = vrcp.f32 %v1720_v15 }
 0x242   : > { %2951 = vrcp.f32 %v1718_v16 }
 0x244   : > { %v2938_v17 = vpop.eup %2937 }
 0x245   : > { %v2940_v56 = vpop.eup %2939  ;;  %v1723_v19 = vadd.f32 1.0, %v2938_v17  ;;  %v2889_v17 = vld [vmem:[%s3675_s9] sm:$0xff]  }
 0x246   : > { %v2942_v21 = vpop.eup %2941  ;;  %v1721_v22 = vadd.f32 1.0, %v2940_v56  ;;  %v2894_v56 = vld [vmem:[%s3675_s9 + $0x28] sm:$0xff]  }
 0x247   : > { %v2944_v25 = vpop.eup %2943  ;;  %2953 = vrcp.f32 %v1723_v19  ;;  %v1724_v59 = vadd.f32 1.0, %v2942_v21  ;;  %v2895_v19 = vld [vmem:[%s3675_s9 + $0x30] sm:$0xff]   ;;  %v2896_v21 = vld [vmem:[%s3675_s9 + $0x38] sm:$0xff]  }
 0x248   : > { %2955 = vrcp.f32 %v1721_v22  ;;  %v1722_v28 = vadd.f32 1.0, %v2944_v25  ;;  %v2410_v22 = vld [vmem:[%s3674_s8] ss:$0 sm:$0xff] }
 0x249   : > { %v2946_v29 = vpop.eup %2945  ;;  %2957 = vrcp.f32 %v1724_v59 }
 0x24a   : > { %v2948_v32 = vpop.eup %2947  ;;  %2959 = vrcp.f32 %v1722_v28  ;;  %v1743_v38 = vmul.f32 %v2946_v29, %v1671_v50  ;;  %v2887_v50 = vld [vmem:[%s3673_s7 + $0x30] sm:$0xff]  }
 0x24b   : > { %v2950_v33 = vpop.eup %2949  ;;  %v1741_v43 = vmul.f32 %v2948_v32, %v1663_v18  ;;  %2722 = vmatprep.subr.bf16.mxu1 %v2887_v50  ;;  %v2888_v18 = vld [vmem:[%s3673_s7 + $0x38] sm:$0xff]  }
 0x24c   : > { %v2952_v37 = vpop.eup %2951  ;;  %v1744_v41 = vmul.f32 %v2950_v33, %v1674_v58  ;;  %2723 = vmatpush3.bf16.msra.mxu1 %v2887_v50  ;;  %v2401_v58 = vld [vmem:[%s3672_s6] ss:$0 sm:$0xff] }
 0x24d   : > { %v1742_v42 = vmul.f32 %v2952_v37, %v1666_v62  ;;  %2724 = vmatprep.subr.bf16.mxu1 %v2888_v18 }
 0x24e   : > { %v1750_v46 = vpack.c.bf16 %v1744_v41, %v1743_v38 }
 0x24f   : > { %v1749_v8 = vpack.c.bf16 %v1742_v42, %v1741_v43 }
 0x250   : > { %2725 = vmatpush3.bf16.msra.mxu1 %v2888_v18 }
 0x251   : > { %v2954_v47 = vpop.eup %2953  ;;  %2702 = vmatprep.mubr.bf16.mxu0 %v1749_v8 }
 0x252   : > { %v2956_v48 = vpop.eup %2955  ;;  %2703 = vmatmul.mubr.bf16.vlgmr.msra.gmra.mrb[40].mxu0 %v1750_v46  ;;  %v1747_v11 = vmul.f32 %v2954_v47, %v1687_v0 }
 0x253   : > { %v2958_v49 = vpop.eup %2957  ;;  %v1745_v52 = vmul.f32 %v2956_v48, %v1679_v40  ;;  %2735 = vmatpush3.bf16.msra.mxu0 %v2889_v17 }
 0x254   : > { %v2960_v44 = vpop.eup %2959  ;;  %v1748_v51 = vmul.f32 %v2958_v49, %v1690_v1  ;;  %2736 = vmatprep.subr.bf16.mxu0 %v3061_v23 }
 0x255   : > { %v1746_v54 = vmul.f32 %v2960_v44, %v1682_v45 }
 0x256   : > { %v1752_v57 = vpack.c.bf16 %v1748_v51, %v1747_v11 }
 0x257   : > { %v1751_v60 = vpack.c.bf16 %v1746_v54, %v1745_v52 }
 0x259   : > { %2706 = vmatprep.mubr.bf16.mxu0 %v1751_v60 }
 0x25a   : > { %2707 = vmatmul.mubr.bf16.gmra.mrb[44].mxu0 %v1752_v57 }
 0x25b   : > { %2750 = vmatprep.mubr.msk.bf16.mxu0 %vm3062_vm1, %v3061_v23 }
 0x325   : > { %v2704_v61 = vpop.f32.mrb[40].mxu0 }
 0x326   : > { %v1867_v62 = vadd.f32 %v2704_v61, %v2401_v58  ;;  %v1858_v30 = vpop.f32.mrb[41].mxu0 }
 0x327   : > { %v1859_v63 = vadd.f32 %v2401_v58, %v1858_v30  ;;  %v2705_v35 = vpop.f32.mrb[42].mxu0 }
 0x328   : > { %v1870_v0 = vadd.f32 %v2705_v35, %v2401_v58  ;;  %v1861_v2 = vpop.f32.mrb[43].mxu0  ;;  %v1891_v3 = vadd.f32 %v1867_v62, %v3312_v20 }
 0x329   : > { %v1862_v40 = vadd.f32 %v2401_v58, %v1861_v2  ;;  %v1889_v1 = vadd.f32 %v1859_v63, %v3314_v24 }
 0x32a   : > { %v1892_v4 = vadd.f32 %v1870_v0, %v3317_v26 }
 0x32b   : > { %v1890_v53 = vadd.f32 %v1862_v40, %v3320_v27 }
 0x32c   : > { %v1898_v5 = vpack.c.bf16 %v1892_v4, %v1891_v3 }
 0x32d   : > { %v2708_v45 = vpop.f32.mrb[44].mxu0  ;;  %v1897_v6 = vpack.c.bf16 %v1890_v53, %v1889_v1 }
 0x32e   : > { %v1883_v55 = vadd.f32 %v2708_v45, %v2401_v58  ;;  %v1874_v7 = vpop.f32.mrb[45].mxu0 }
 0x32f   : > { %v1875_v9 = vadd.f32 %v2401_v58, %v1874_v7  ;;  %v2709_v10 = vpop.f32.mrb[46].mxu0  ;;  %2726 = vmatprep.mubr.bf16.mxu1 %v1897_v6 }
 0x330   : > { %v1886_v12 = vadd.f32 %v2709_v10, %v2401_v58  ;;  %v1877_v13 = vpop.f32.mrb[47].mxu0  ;;  %2727 = vmatmul.mubr.bf16.vlgmr.msra.gmra.mrb[40].mxu1 %v1898_v5  ;;  %v1895_v20 = vadd.f32 %v1883_v55, %v3325_v31  ;;  %v2890_v31 = vld [vmem:[%s3675_s9 + $0x8] sm:$0xff]  }
 0x331   : > { %v1878_v14 = vadd.f32 %v2401_v58, %v1877_v13  ;;  %v1893_v24 = vadd.f32 %v1875_v9, %v3327_v34  ;;  %2737 = vmatpush3.bf16.msra.mxu0 %v2890_v31  ;;  %v2891_v34 = vld [vmem:[%s3675_s9 + $0x10] sm:$0xff]  }
 0x332   : > { %v1896_v26 = vadd.f32 %v1886_v12, %v3330_v36  ;;  %2738 = vmatprep.subr.bf16.mxu0 %v3061_v23  ;;  %v2892_v36 = vld [vmem:[%s3675_s9 + $0x18] sm:$0xff]  }
 0x333   : > { %v1894_v27 = vadd.f32 %v1878_v14, %v3336_v39  ;;  %v2893_v39 = vld [vmem:[%s3675_s9 + $0x20] sm:$0xff]  }
 0x334   : > { %v1900_v15 = vpack.c.bf16 %v1896_v26, %v1895_v20 }
 0x335   : > { %v1899_v16 = vpack.c.bf16 %v1894_v27, %v1893_v24  ;;  %2739 = vmatpush3.bf16.msra.mxu0 %v2891_v34 }
 0x336   : > { %2740 = vmatprep.subr.bf16.mxu0 %v3061_v23 }
 0x337   : > { %2730 = vmatprep.mubr.bf16.mxu1 %v1899_v16 }
 0x338   : > { %2731 = vmatmul.mubr.bf16.gmra.mrb[44].mxu1 %v1900_v15 }
 0x339   : > { %2741 = vmatpush3.bf16.msra.mxu0 %v2892_v36 }
 0x33a   : > { %2742 = vmatprep.subr.bf16.mxu0 %v3061_v23 }
 0x33d   : > { %2743 = vmatpush3.bf16.msra.mxu0 %v2893_v39 }
 0x33e   : > { %2744 = vmatprep.subr.bf16.mxu0 %v3061_v23 }
 0x341   : > { %2745 = vmatpush3.bf16.msra.mxu0 %v2894_v56 }
 0x342   : > { %2746 = vmatprep.subr.bf16.mxu0 %v3061_v23 }
 0x345   : > { %2747 = vmatpush3.bf16.msra.mxu0 %v2895_v19 }
 0x346   : > { %2748 = vmatprep.subr.bf16.mxu0 %v3061_v23 }
 0x349   : > { %2749 = vmatpush3.bf16.msra.mxu0 %v2896_v21 }
 0x403   : > { %v2728_v25 = vpop.f32.mrb[40].mxu1 }
 0x404   : > { %v2015_v59 = vadd.f32 %v2728_v25, %v2410_v22  ;;  %v2006_v28 = vpop.f32.mrb[41].mxu1 }
 0x405   : > { %v2007_v29 = vadd.f32 %v2410_v22, %v2006_v28  ;;  %v2729_v32 = vpop.f32.mrb[42].mxu1 }
 0x406   : > { %v2421_v33 = vmul.f32 -1.442695, %v2015_v59  ;;  %v2018_v37 = vadd.f32 %v2729_v32, %v2410_v22  ;;  %v2009_v38 = vpop.f32.mrb[43].mxu1 }
 0x407   : > { %v2419_v41 = vmul.f32 -1.442695, %v2007_v29  ;;  %v2010_v43 = vadd.f32 %v2410_v22, %v2009_v38  ;;  %v2125_v38 = vld [vmem:[%s3676_s10] sm:$0x1] }
 0x408   : > { %2961 = vpow2.f32 %v2421_v33  ;;  %v2422_v42 = vmul.f32 -1.442695, %v2018_v37 }
 0x409   : > { %2963 = vpow2.f32 %v2419_v41  ;;  %v2420_v46 = vmul.f32 -1.442695, %v2010_v43 }
 0x40a   : > { %2965 = vpow2.f32 %v2422_v42 }
 0x40b   : > { %2967 = vpow2.f32 %v2420_v46  ;;  %v2732_v23 = vpop.f32.mrb[44].mxu1 }
 0x40c   : > { %v2031_v8 = vadd.f32 %v2732_v23, %v2410_v22  ;;  %v2022_v47 = vpop.f32.mrb[45].mxu1 }
 0x40d   : > { %v2023_v48 = vadd.f32 %v2410_v22, %v2022_v47  ;;  %v2733_v49 = vpop.f32.mrb[46].mxu1 }
 0x40e   : > { %v2425_v44 = vmul.f32 -1.442695, %v2031_v8  ;;  %v2034_v11 = vadd.f32 %v2733_v49, %v2410_v22  ;;  %v2025_v51 = vpop.f32.mrb[47].mxu1 }
 0x40f   : > { %v2423_v52 = vmul.f32 -1.442695, %v2023_v48  ;;  %v2026_v54 = vadd.f32 %v2410_v22, %v2025_v51 }
 0x410   : > { %2969 = vpow2.f32 %v2425_v44  ;;  %v2426_v57 = vmul.f32 -1.442695, %v2034_v11 }
 0x411   : > { %2971 = vpow2.f32 %v2423_v52  ;;  %v2424_v60 = vmul.f32 -1.442695, %v2026_v54 }
 0x412   : > { %v2962_v50 = vpop.eup %2961  ;;  %2973 = vpow2.f32 %v2426_v57 }
 0x413   : > { %v2964_v18 = vpop.eup %2963  ;;  %v2063_v58 = vadd.f32 1.0, %v2962_v50  ;;  %2975 = vpow2.f32 %v2424_v60 }
 0x414   : > { %v2966_v61 = vpop.eup %2965  ;;  %v2061_v62 = vadd.f32 1.0, %v2964_v18 }
 0x415   : > { %v2968_v30 = vpop.eup %2967  ;;  %v2064_v63 = vadd.f32 1.0, %v2966_v61 }
 0x416   : > { %2977 = vrcp.f32 %v2061_v62  ;;  %v2062_v35 = vadd.f32 1.0, %v2968_v30 }
 0x417   : > { %2979 = vrcp.f32 %v2063_v58 }
 0x418   : > { %2981 = vrcp.f32 %v2062_v35 }
 0x419   : > { %2983 = vrcp.f32 %v2064_v63 }
 0x41a   : > { %v2970_v0 = vpop.eup %2969 }
 0x41b   : > { %v2972_v2 = vpop.eup %2971  ;;  %v2067_v40 = vadd.f32 1.0, %v2970_v0 }
 0x41c   : > { %v2974_v3 = vpop.eup %2973  ;;  %v2065_v4 = vadd.f32 1.0, %v2972_v2 }
 0x41d   : > { %v2976_v1 = vpop.eup %2975  ;;  %v2068_v53 = vadd.f32 1.0, %v2974_v3 }
 0x41e   : > { %2985 = vrcp.f32 %v2065_v4  ;;  %v2066_v5 = vadd.f32 1.0, %v2976_v1 }
 0x41f   : > { %2987 = vrcp.f32 %v2067_v40 }
 0x420   : > { %v2978_v45 = vpop.eup %2977  ;;  %2989 = vrcp.f32 %v2066_v5 }
 0x421   : > { %v2980_v6 = vpop.eup %2979  ;;  %2991 = vrcp.f32 %v2068_v53  ;;  %v2085_v7 = vmul.f32 %v2978_v45, %v2007_v29 }
 0x422   : > { %v2982_v55 = vpop.eup %2981  ;;  %v2087_v12 = vmul.f32 %v2980_v6, %v2015_v59 }
 0x423   : > { %v2086_v9 = vmul.f32 %v2982_v55, %v2010_v43  ;;  %v2984_v10 = vpop.eup %2983 }
 0x424   : > { %v2088_v14 = vmul.f32 %v2984_v10, %v2018_v37 }
 0x425   : > { %v2093_v13 = vadd.f32 %v2086_v9, %v2085_v7 }
 0x427   : > { %v2094_v20 = vadd.f32 %v2093_v13, %v2087_v12 }
 0x428   : > { %v2986_v26 = vpop.eup %2985 }
 0x429   : > { %v2988_v24 = vpop.eup %2987  ;;  %v2089_v27 = vmul.f32 %v2986_v26, %v2023_v48  ;;  %v2095_v15 = vadd.f32 %v2094_v20, %v2088_v14 }
 0x42a   : > { %v2990_v16 = vpop.eup %2989  ;;  %v2091_v36 = vmul.f32 %v2988_v24, %v2031_v8 }
 0x42b   : > { %v2096_v17 = vadd.f32 %v2095_v15, %v2089_v27  ;;  %v2090_v31 = vmul.f32 %v2990_v16, %v2026_v54  ;;  %v2992_v34 = vpop.eup %2991 }
 0x42c   : > { %v2092_v56 = vmul.f32 %v2992_v34, %v2034_v11 }
 0x42d   : > { %v2097_v39 = vadd.f32 %v2096_v17, %v2090_v31 }
 0x42f   : > { %v2098_v19 = vadd.f32 %v2097_v39, %v2091_v36 }
 0x431   : > { %v2099_v21 = vadd.f32 %v2098_v19, %v2092_v56 }
 0x433   : > { %v2100_v22 = vrot.slane %v2099_v21, 4 }
 0x435   : > { %v2101_v25 = vadd.f32 %v2100_v22, %v2099_v21 }
 0x437   : > { %v2102_v28 = vrot.slane %v2101_v25, 2 }
 0x439   : > { %v2103_v59 = vadd.f32 %v2102_v28, %v2101_v25 }
 0x43b   : > { %v2104_v29 = vrot.slane %v2103_v59, 1 }
 0x43d   : > { %v2105_v32 = vadd.f32 %v2104_v29, %v2103_v59 }
 0x43f   : > { %v2107_v33 = vmul.f32 0.015625, %v2105_v32 }
 0x441   : > { %v2108_v37 = vpack.c.bf16 %v2107_v33, %v2107_v33 }
 0x443   : > { %2751 = vmatmul.mubr.bf16.vlgmr.msra.gmra.mrb[48].mxu0 %v2108_v37 }
 0x516   : > { %v2208_v41 = vpop.f32.mrb[48].mxu0 }
 0x517   : > { %v2209_v43 = vadd.f32 %v2208_v41, %v2125_v38  ;;  %v2752_v42 = vpop.f32.mrb[49].mxu0 }
 0x518   : > { %v2211_v46 = vpop.f32.mrb[50].mxu0 }
 0x519   : > { %v2753_v23 = vpop.f32.mrb[51].mxu0  ;;  %v2215_v8 = vsel %vm2214_vm2, %v2209_v43, -inf }
 0x51a   : > { %2216 = vmax.xlane.f32.xlu0 %v2215_v8 }
 0x5a7   : > { %v2217_v47 = vpop.xlane.xlu0 %2216 }
 0x5a8   : > { %v2218_v48 = vsub.f32 %v2209_v43, %v2217_v47 }
 0x5aa   : > { %v2219_v49 = vmul.f32 1.442695, %v2218_v48 }
 0x5ac   : > { %2993 = vpow2.f32 %v2219_v49 }
 0x5b6   : > { %v2994_v44 = vpop.eup %2993 }
 0x5b7   : > { %v2221_v11 = vsel %vm2214_vm2, %v2994_v44, 0.0 }
 0x5b8   : > { %2222 = vadd.xlane.f32.xlu0 %v2221_v11 }
 0x645   : > { %v2223_v51 = vpop.xlane.xlu0 %2222 }
 0x646   : > { %2995 = vrcp.f32 %v2223_v51 }
 0x650   : > { %v2996_v52 = vpop.eup %2995 }
 0x651   : > { %v2225_v54 = vmul.f32 %v2996_v52, %v2994_v44 }
 0x653   : > { %2226 = vst [vmem:[%s378_s13] sm:$0x1] %v2225_v54 }
 0x654   : > { %3010 = shalt.err (!%p3007_p3)
}
 0x655   : > { %s3011_s30 = scalar_lea.hbm %s3624_s22, 16  ;;  %s3015_s15 = scalar_lea.hbm %s3677_s11, 32 }
 0x656   : > { %p3012_p4 = scmp.ne.s32.totalorder %s3624_s22, %s3011_s30  ;;  %p3016_p9 = scmp.lt.u32.totalorder %s3624_s22, %s3677_s11 }
 0x657   : > { %p3017_p10 = scmp.lt.u32.totalorder %s3015_s15, %s3011_s30  ;;  %p3019_p12 = scmp.lt.u32.totalorder %s3011_s30, %s3624_s22 }
 0x658   : > { %p3013_p7 = pnand %p3012_p4, %p3162_p5 }
 0x659   : > { %p3018_p11 = por %p3017_p10, %p3016_p9 }
 0x65a   : > { %p3014_p8 = pneg %p3013_p7 }
 0x65b   : > { %p3020_p13 = por %p3019_p12, %p3018_p11 }
 0x65d   : > { %p3021_p0 = pnand %p3020_p13, %p3014_p8 }
 0x65f   : > { %3024 = shalt.err (!%p3021_p0)
}
 0x660   : > { %2754 = dma.vmem_to_hbm [thread:$0]  (%p3162_p5), %s3626_s14, 16, %s3624_s22, %s2228_s24  }
 0x661 PF: > { %p2760_p1 = scmp.ge.s32.totalorder %s3059_s20, 2  ;;  %s2252_s0 = sand.u32 1, %s3047_s17  }
 0x662   : > { %s2253_s25 = scalar_lea.sflag [#allocation5], %s2252_s0 }
 0x663   : > { %p2757_p2 = pnand %p2760_p1, %p3166_p6 }
 0x665   : > { %3042 = dma.done.wait (!%p2757_p2), %s2253_s25, 16  }
 0x666   : > { %3044 = vsyncadd (!%p2757_p2), %s2253_s25, 4294967280  ;;  %p21_p3 = scmp.ge.s32.totalorder %s3149_s23, 4   ;;  %s3682_s17 = smov %s3051_s18 }
 0x667   : > { %s3683_s18 = smov %s3055_s19  ;;  %s3684_s19 = smov %s3160_s26 }
 0x668   : > { %s3685_s20 = smov %s3149_s23  ;;  %23 = sbr.rel (!%p21_p3) target bundleno = 5 (0x5), region = 102 }
 0x66f   :  { %2257 = vsyncpa [#allocation5], 1 }
 0x670   :  { %2259 = vsyncpa [#allocation5 + $0x1], 1 }

</bundles_post_ra>
